<compile_context>
chip_gen: v5e
topology: v5e:2x2
jax: 0.10.0
libtpu: 0.0.40
codegen_flags: <defaults>
</compile_context>

<pallas_src>
import functools
import numpy as np
import jax
import jax.numpy as jnp
from jax.experimental import pallas as pl
from jax.experimental.pallas import tpu as pltpu

LANE = 128
SUBLANE = 8


def _round_up(x, m):
    return ((x + m - 1) // m) * m


def _cdiv(a, b):
    return (a + b - 1) // b


def _seq2seq_cnn_kernel(x_ref, *refs, kernel_sizes, TB, Lt, P, Pin, Cin, H, CH,
                        need_inpad, seq_tiled):
    """refs = (w0, b0, w1, b1, ..., out_ref, [xpad], [col], [carry])."""
    n_layers = len(kernel_sizes)
    max_k = max(kernel_sizes)
    w_refs = refs[0:2 * n_layers:2]          # (k_l * K_l, P), compute dtype, tap-major
    b_refs = refs[1:2 * n_layers:2]          # (1, P), f32
    out_ref = refs[2 * n_layers]
    scratch = list(refs[2 * n_layers + 1:])
    xpad_ref = scratch.pop(0) if need_inpad else None
    col_ref = scratch.pop(0) if max_k > 1 else None
    carry_ref = scratch.pop(0) if (max_k > 1 and seq_tiled) else None

    cdt = x_ref.dtype
    rows = TB * Lt

    # Cross-seq-tile causal history: reset at the first seq step of every batch block.
    # The seq axis is the innermost ("arbitrary") grid axis, so this is correct even
    # when the batch axis is sharded across TensorCores.
    if carry_ref is not None:
        @pl.when(pl.program_id(1) == 0)
        def _zero_carry():
            carry_ref[...] = jnp.zeros_like(carry_ref)

    # Channel-pad the input block to a lane-multiple width inside VMEM (the HBM tensor
    # stays unpadded -> no P/Cin x HBM-traffic blowup).
    if need_inpad:
        xpad_ref[...] = jnp.zeros_like(xpad_ref)
        xpad_ref[:, :, :Cin] = x_ref[...]
        h = xpad_ref[...]
    else:
        h = x_ref[...]

    hist = 0
    for l, k in enumerate(kernel_sizes):
        Kl = Pin if l == 0 else P
        w_ref = w_refs[l]
        h2 = h.reshape(rows, Kl)
        if k == 1:
            acc = jnp.dot(h2, w_ref[...], preferred_element_type=jnp.float32)
        else:
            # Persistent im2col scratch, reused across layers: tap d (d >= 1) lives at
            # static lane offset (d-1)*P; tap 0 feeds the MXU straight from `h`.
            for d in range(1, k):
                dz = min(d, Lt)
                lo = (d - 1) * P
                if seq_tiled:
                    # first d rows: causal history from the previous seq tile
                    col_ref[:, :dz, lo:lo + P] = carry_ref[hist, :, CH - dz:, :]
                else:
                    col_ref[:, :dz, lo:lo + P] = jnp.zeros((TB, dz, P), cdt)
                if d < Lt:
                    # remaining rows: current tile shifted down by d (per-batch, so
                    # history never leaks across batch elements).
                    # TODO(synk): on v5e consider pltpu.roll (XLU) + select instead of
                    #             sublane-offset stores to relieve the single vst slot.
                    col_ref[:, d:, lo:lo + P] = h[:, :Lt - d, :]
            if seq_tiled:
                # save this tile's tail as the next tile's history (history was read
                # above before being overwritten)
                carry_ref[hist, :, CH - (k - 1):, :] = h[:, Lt - (k - 1):, :]
            hist += 1
            stack = col_ref[:, :, :(k - 1) * P].reshape(rows, (k - 1) * P)
            acc = jnp.dot(h2, w_ref[:Kl, :], preferred_element_type=jnp.float32)
            acc = acc + jnp.dot(stack, w_ref[Kl:k * Kl, :],
                                preferred_element_type=jnp.float32)
        acc = jax.nn.silu(acc + b_refs[l][...])   # bias + SiLU in f32; Dropout = identity
        if l == n_layers - 1:
            out_ref[...] = acc.reshape(TB, Lt, P)[:, :, :H].astype(out_ref.dtype)
        else:
            h = acc.reshape(TB, Lt, P).astype(cdt)


def seq2seq_cnn_aggregator(x, kernel_params, *, vmem_budget_bytes=8 << 20):
    """x: (B, L, Cin).  kernel_params: list of (w_taps (k, cin, cout), bias (1, cout)),
    where tap d multiplies x[t-d] (causal).  Dropout layers are identity (inference)."""
    B, L, Cin = (int(s) for s in x.shape)
    kernel_sizes = tuple(int(w.shape[0]) for (w, _) in kernel_params)
    max_k = max(kernel_sizes)
    H = int(kernel_params[-1][0].shape[2])
    cdt = x.dtype
    isz = x.dtype.itemsize

    # Lane widths: P for hidden layers, Pin for the raw input.  Widths <= 128 are not
    # padded further -- the M dimension (TB*Lt), not N/K, keeps the MXU fed.
    inner = []
    for l, (w, _) in enumerate(kernel_params):
        k, cin, cout = (int(s) for s in w.shape)
        inner.append(cout)
        if l > 0:
            inner.append(cin)
    P = _round_up(max(inner), LANE)
    if kernel_sizes[0] == 1:
        Pin = _round_up(Cin, LANE)
    else:
        P = _round_up(max(inner + [Cin]), LANE)
        Pin = P
    need_inpad = (Cin != Pin)
    CH = _round_up(max(max_k - 1, 1), SUBLANE)

    # ---- tile selection from a per-grid-step VMEM working-set byte budget ----
    per_row = (2 * Cin * isz + 2 * H * isz              # in/out blocks, double-buffered
               + (Pin * isz if need_inpad else 0)       # channel-pad scratch
               + (max_k - 1) * P * isz                  # im2col scratch
               + 2 * P * 4 + 2 * P * isz)               # live h / f32 acc temporaries
    rows_budget = max(int(vmem_budget_bytes) // max(per_row, 1), 8)
    row_align = max(SUBLANE, 32 // isz)                 # 8 (f32) / 16 (bf16) / 32 (int8)

    if L <= rows_budget:
        seq_tiled = False
        ns = 1
        TB = max(1, min(rows_budget // max(L, 1), B))
        if B > 1:                                       # keep >= 2 batch blocks so both
            TB = min(TB, (B + 1) // 2)                  # v7x TensorCores get work
        Lt = _round_up(L, row_align) if TB > 1 else L
    else:
        # long sequences: tile L; per-layer causal history is carried across seq tiles
        seq_tiled = True
        TB = 1
        Lt = max(row_align, (rows_budget // row_align) * row_align)
        Lt = max(Lt, _round_up(max_k - 1, row_align))
        Lt = min(Lt, _round_up(L, row_align))
        ns = _cdiv(L, Lt)
    nb = _cdiv(B, TB)
    Bp, Lp = nb * TB, ns * Lt

    xin = x if (Bp == B and Lp == L) else jnp.pad(x, ((0, Bp - B), (0, Lp - L), (0, 0)))

    # ---- pack weights once per call: tap-major, channel-padded, compute dtype ----
    flat = []
    n_hist = 0
    for l, (w, b) in enumerate(kernel_params):
        k, cin, cout = (int(s) for s in w.shape)
        Kl = Pin if l == 0 else P
        wp = jnp.zeros((k, Kl, P), jnp.float32).at[:, :cin, :cout].set(w.astype(jnp.float32))
        wp = wp.reshape(k * Kl, P).astype(cdt)
        bp = jnp.zeros((1, P), jnp.float32).at[:, :cout].set(
            jnp.asarray(b, jnp.float32).reshape(1, cout))
        flat += [wp, bp]
        if k > 1:
            n_hist += 1

    kernel = functools.partial(
        _seq2seq_cnn_kernel, kernel_sizes=kernel_sizes, TB=TB, Lt=Lt, P=P, Pin=Pin,
        Cin=Cin, H=H, CH=CH, need_inpad=need_inpad, seq_tiled=seq_tiled)

    # Weights/biases: whole-array, single-buffered VMEM residents (constant across the
    # grid -> double-buffering them buys nothing).
    const_spec = pl.BlockSpec(memory_space=pltpu.MemorySpace.VMEM)

    scratch_shapes = []
    if need_inpad:
        scratch_shapes.append(pltpu.VMEM((TB, Lt, Pin), cdt))
    if max_k > 1:
        scratch_shapes.append(pltpu.VMEM((TB, Lt, (max_k - 1) * P), cdt))
        if seq_tiled:
            scratch_shapes.append(pltpu.VMEM((n_hist, TB, CH, P), cdt))

    # Explicit VMEM limit (default scoped limit is 16/32 MiB); capped at v7x's 64 MiB.
    wbytes = sum(int(np.prod(a.shape)) * a.dtype.itemsize for a in flat)
    scrbytes = TB * Lt * isz * ((Pin if need_inpad else 0) + (max_k - 1) * P)
    if max_k > 1 and seq_tiled:
        scrbytes += n_hist * TB * CH * P * isz
    est = (2 * TB * Lt * (Cin + H) * isz + scrbytes + wbytes
           + 2 * TB * Lt * P * (isz + 4))
    vmem_limit = int(min(max(32 << 20, 2 * est), 64 << 20))

    flops = 2 * B * L * sum(int(w.shape[0]) * int(w.shape[1]) * int(w.shape[2])
                            for (w, _) in kernel_params)
    transcendentals = B * L * sum(int(w.shape[2]) for (w, _) in kernel_params)
    bytes_accessed = (B * L * Cin + B * L * H) * isz + wbytes
    cost = pl.CostEstimate(flops=flops, transcendentals=transcendentals,
                           bytes_accessed=bytes_accessed)

    out = pl.pallas_call(
        kernel,
        out_shape=jax.ShapeDtypeStruct((Bp, Lp, H), x.dtype),
        grid_spec=pltpu.PrefetchScalarGridSpec(
            num_scalar_prefetch=0,
            grid=(nb, ns),
            in_specs=[pl.BlockSpec((TB, Lt, Cin), lambda b, s: (b, s, 0))]
                     + [const_spec] * len(flat),
            out_specs=pl.BlockSpec((TB, Lt, H), lambda b, s: (b, s, 0)),
            scratch_shapes=scratch_shapes,
        ),
        compiler_params=pltpu.CompilerParams(
            dimension_semantics=("parallel", "arbitrary"),
            vmem_limit_bytes=vmem_limit),
        cost_estimate=cost,
    )(xin, *flat)

    if Bp != B or Lp != L:
        out = out[:B, :L, :]
    return out


# ---------------- deterministic parameter init (PyTorch Conv1d layout) --------
def init_conv1d(key, out_ch, in_ch, k):
    kw, kb = jax.random.split(key)
    bound = 1.0 / np.sqrt(in_ch * k)          # PyTorch default uniform bound
    w = jax.random.uniform(kw, (out_ch, in_ch, k), jnp.float32, -bound, bound)
    b = jax.random.uniform(kb, (1, out_ch), jnp.float32, -bound, bound)
    return w, b


def torch_weight_to_taps(w):
    # (out, in, k) PyTorch Conv1d layout -> (k, in, out) where tap d hits x[t-d]
    return jnp.transpose(w[:, :, ::-1], (2, 1, 0))


# ---------------- pure-JAX reference (for correctness check) ------------------
def reference_forward(x, torch_params):
    h = x
    for (w, b, k) in torch_params:
        hp = jnp.pad(h, ((0, 0), (k - 1, 0), (0, 0)))      # causal left pad
        stacked = jnp.stack([hp[:, j:j + h.shape[1], :] for j in range(k)], axis=2)
        out = jnp.einsum('blji,oij->blo', stacked, w) + b.reshape(1, 1, -1)
        h = jax.nn.silu(out)                               # dropout = identity
    return h


if __name__ == "__main__":
    key = jax.random.PRNGKey(0)
    B, L = 2, 8
    input_size, hidden = 32, 32
    kernel_sizes = [1, 5, 3, 2]                # TimeCnn(...,1), (...,5), (...,3), (...,2)

    keys = jax.random.split(key, len(kernel_sizes) + 1)
    x = jax.random.normal(keys[0], (B, L, input_size), jnp.float32)

    torch_params = []
    in_ch = input_size
    for i, k in enumerate(kernel_sizes):
        w, b = init_conv1d(keys[i + 1], hidden, in_ch, k)
        torch_params.append((w, b, k))
        in_ch = hidden

    kernel_params = [(torch_weight_to_taps(w), b) for (w, b, _) in torch_params]
    ref = reference_forward(x, torch_params)

    # 1) f32 path (two batch blocks -> both v7x cores busy), tight tolerance
    out = jax.block_until_ready(seq2seq_cnn_aggregator(x, kernel_params))
    np.testing.assert_allclose(np.asarray(out), np.asarray(ref), rtol=1e-4, atol=1e-5)

    # 2) batch folding + batch padding (B=5 -> TB=3, Bp=6)
    x2 = jax.random.normal(jax.random.PRNGKey(7), (5, L, input_size), jnp.float32)
    out2 = jax.block_until_ready(seq2seq_cnn_aggregator(x2, kernel_params))
    np.testing.assert_allclose(np.asarray(out2),
                               np.asarray(reference_forward(x2, torch_params)),
                               rtol=1e-4, atol=1e-5)

    # 3) ragged L with TB > 1 (exercises row padding, Lt=16)
    x3 = jax.random.normal(jax.random.PRNGKey(11), (6, 10, input_size), jnp.float32)
    out3 = jax.block_until_ready(seq2seq_cnn_aggregator(x3, kernel_params))
    np.testing.assert_allclose(np.asarray(out3),
                               np.asarray(reference_forward(x3, torch_params)),
                               rtol=1e-4, atol=1e-5)

    # 4) long-sequence tiling with cross-tile causal carry (tiny budget -> Lt=8, ns=8)
    x4 = jax.random.normal(jax.random.PRNGKey(13), (2, 60, input_size), jnp.float32)
    out4 = jax.block_until_ready(
        seq2seq_cnn_aggregator(x4, kernel_params, vmem_budget_bytes=64 * 1024))
    np.testing.assert_allclose(np.asarray(out4),
                               np.asarray(reference_forward(x4, torch_params)),
                               rtol=1e-4, atol=1e-5)

    # 5) bf16 MXU path (v6e/v7x-style deployment); loose tolerance vs f32 reference
    out_bf16 = jax.block_until_ready(
        seq2seq_cnn_aggregator(x.astype(jnp.bfloat16), kernel_params))
    np.testing.assert_allclose(np.asarray(out_bf16.astype(jnp.float32)),
                               np.asarray(ref), rtol=1e-1, atol=5e-2)

    print("KERNEL_OK")
</pallas_src>

<mosaic_0001>
module attributes {stable_mosaic.version = 11 : i64} {
  func.func @_seq2seq_cnn_kernel(%arg0: i32, %arg1: i32, %arg2: memref<1x8x32xf32, #tpu.memory_space<vmem>>, %arg3: memref<128x128xf32, #tpu.memory_space<vmem>>, %arg4: memref<1x128xf32, #tpu.memory_space<vmem>>, %arg5: memref<640x128xf32, #tpu.memory_space<vmem>>, %arg6: memref<1x128xf32, #tpu.memory_space<vmem>>, %arg7: memref<384x128xf32, #tpu.memory_space<vmem>>, %arg8: memref<1x128xf32, #tpu.memory_space<vmem>>, %arg9: memref<256x128xf32, #tpu.memory_space<vmem>>, %arg10: memref<1x128xf32, #tpu.memory_space<vmem>>, %arg11: memref<1x8x32xf32, #tpu.memory_space<vmem>>, %arg12: memref<1x8x128xf32, #tpu.memory_space<vmem>>, %arg13: memref<1x8x512xf32, #tpu.memory_space<vmem>>) attributes {dimension_semantics = [#tpu.dimension_semantics<parallel>, #tpu.dimension_semantics<arbitrary>], iteration_bounds = array<i64: 2, 1>, scalar_prefetch = 0 : i64, scratch_operands = 2 : i64, tpu.core_type = #tpu.core_type<tc>, window_params = [{transform_indices = @transform_0, window_bounds = array<i64: 1, 8, 32>}, {pipeline_mode = #tpu.pipeline_mode<synchronous>, transform_indices = @transform_1, window_bounds = array<i64: 128, 128>}, {pipeline_mode = #tpu.pipeline_mode<synchronous>, transform_indices = @transform_2, window_bounds = array<i64: 1, 128>}, {pipeline_mode = #tpu.pipeline_mode<synchronous>, transform_indices = @transform_3, window_bounds = array<i64: 640, 128>}, {pipeline_mode = #tpu.pipeline_mode<synchronous>, transform_indices = @transform_4, window_bounds = array<i64: 1, 128>}, {pipeline_mode = #tpu.pipeline_mode<synchronous>, transform_indices = @transform_5, window_bounds = array<i64: 384, 128>}, {pipeline_mode = #tpu.pipeline_mode<synchronous>, transform_indices = @transform_6, window_bounds = array<i64: 1, 128>}, {pipeline_mode = #tpu.pipeline_mode<synchronous>, transform_indices = @transform_7, window_bounds = array<i64: 256, 128>}, {pipeline_mode = #tpu.pipeline_mode<synchronous>, transform_indices = @transform_8, window_bounds = array<i64: 1, 128>}, {transform_indices = @transform_9, window_bounds = array<i64: 1, 8, 32>}]} {
    %cst = arith.constant 0.000000e+00 : f32
    %0 = vector.broadcast %cst : f32 to vector<1x8x128xf32>
    %c0 = arith.constant 0 : index
    %c0_0 = arith.constant 0 : index
    %c0_1 = arith.constant 0 : index
    %1 = vector.load %arg12[%c0, %c0_0, %c0_1] : memref<1x8x128xf32, #tpu.memory_space<vmem>>, vector<1x8x128xf32>
    tpu.vector_store %arg12[%c0, %c0_0, %c0_1], %0 {strides = array<i32>} : memref<1x8x128xf32, #tpu.memory_space<vmem>>, vector<1x8x128xf32>,
    %c0_2 = arith.constant 0 : index
    %c0_3 = arith.constant 0 : index
    %c0_4 = arith.constant 0 : index
    %2 = vector.load %arg2[%c0_2, %c0_3, %c0_4] : memref<1x8x32xf32, #tpu.memory_space<vmem>>, vector<1x8x32xf32>
    %c0_5 = arith.constant 0 : index
    %c0_6 = arith.constant 0 : index
    %c0_7 = arith.constant 0 : index
    %3 = vector.load %arg12[%c0_5, %c0_6, %c0_7] : memref<1x8x128xf32, #tpu.memory_space<vmem>>, vector<1x8x32xf32>
    tpu.vector_store %arg12[%c0_5, %c0_6, %c0_7], %2 {strides = array<i32>} : memref<1x8x128xf32, #tpu.memory_space<vmem>>, vector<1x8x32xf32>,
    %c0_8 = arith.constant 0 : index
    %c0_9 = arith.constant 0 : index
    %c0_10 = arith.constant 0 : index
    %4 = vector.load %arg12[%c0_8, %c0_9, %c0_10] : memref<1x8x128xf32, #tpu.memory_space<vmem>>, vector<1x8x128xf32>
    %5 = vector.shape_cast %4 : vector<1x8x128xf32> to vector<8x128xf32>
    %c0_11 = arith.constant 0 : index
    %c0_12 = arith.constant 0 : index
    %6 = vector.load %arg3[%c0_11, %c0_12] : memref<128x128xf32, #tpu.memory_space<vmem>>, vector<128x128xf32>
    %cst_13 = arith.constant dense<0.000000e+00> : vector<8x128xf32>
    %7 = tpu.matmul %5, %6, %cst_13 {dimension_numbers = #tpu.dot_dimension_numbers<[1], [0], [0], [1], [0, 0, 1, 1], [], []>} : vector<8x128xf32>, vector<128x128xf32>, vector<8x128xf32> -> vector<8x128xf32>
    %c0_14 = arith.constant 0 : index
    %c0_15 = arith.constant 0 : index
    %8 = vector.load %arg4[%c0_14, %c0_15] : memref<1x128xf32, #tpu.memory_space<vmem>>, vector<1x128xf32>
    %9 = vector.broadcast %8 : vector<1x128xf32> to vector<8x128xf32>
    %10 = arith.addf %7, %9 : vector<8x128xf32>
    %11 = arith.negf %10 : vector<8x128xf32>
    %12 = math.exp %11 : vector<8x128xf32>
    %cst_16 = arith.constant 1.000000e+00 : f32
    %13 = vector.broadcast %cst_16 : f32 to vector<8x128xf32>
    %14 = arith.addf %13, %12 : vector<8x128xf32>
    %15 = arith.divf %13, %14 : vector<8x128xf32>
    %16 = arith.mulf %10, %15 : vector<8x128xf32>
    %17 = vector.shape_cast %16 : vector<8x128xf32> to vector<1x8x128xf32>
    %18 = vector.shape_cast %17 : vector<1x8x128xf32> to vector<8x128xf32>
    %cst_17 = arith.constant 0.000000e+00 : f32
    %19 = vector.broadcast %cst_17 : f32 to vector<1x1x128xf32>
    %c0_18 = arith.constant 0 : index
    %c0_19 = arith.constant 0 : index
    %c0_20 = arith.constant 0 : index
    %20 = vector.load %arg13[%c0_18, %c0_19, %c0_20] : memref<1x8x512xf32, #tpu.memory_space<vmem>>, vector<1x1x128xf32>
    tpu.vector_store %arg13[%c0_18, %c0_19, %c0_20], %19 {strides = array<i32>} : memref<1x8x512xf32, #tpu.memory_space<vmem>>, vector<1x1x128xf32>,
    %21 = vector.extract_strided_slice %17 {offsets = [0, 0, 0], sizes = [1, 7, 128], strides = [1, 1, 1]} : vector<1x8x128xf32> to vector<1x7x128xf32>
    %c0_21 = arith.constant 0 : index
    %c1 = arith.constant 1 : index
    %c0_22 = arith.constant 0 : index
    %22 = vector.load %arg13[%c0_21, %c1, %c0_22] : memref<1x8x512xf32, #tpu.memory_space<vmem>>, vector<1x7x128xf32>
    tpu.vector_store %arg13[%c0_21, %c1, %c0_22], %21 {strides = array<i32>} : memref<1x8x512xf32, #tpu.memory_space<vmem>>, vector<1x7x128xf32>,
    %cst_23 = arith.constant 0.000000e+00 : f32
    %23 = vector.broadcast %cst_23 : f32 to vector<1x2x128xf32>
    %c0_24 = arith.constant 0 : index
    %c0_25 = arith.constant 0 : index
    %c128 = arith.constant 128 : index
    %24 = vector.load %arg13[%c0_24, %c0_25, %c128] : memref<1x8x512xf32, #tpu.memory_space<vmem>>, vector<1x2x128xf32>
    tpu.vector_store %arg13[%c0_24, %c0_25, %c128], %23 {strides = array<i32>} : memref<1x8x512xf32, #tpu.memory_space<vmem>>, vector<1x2x128xf32>,
    %25 = vector.extract_strided_slice %17 {offsets = [0, 0, 0], sizes = [1, 6, 128], strides = [1, 1, 1]} : vector<1x8x128xf32> to vector<1x6x128xf32>
    %c0_26 = arith.constant 0 : index
    %c2 = arith.constant 2 : index
    %c128_27 = arith.constant 128 : index
    %26 = vector.load %arg13[%c0_26, %c2, %c128_27] : memref<1x8x512xf32, #tpu.memory_space<vmem>>, vector<1x6x128xf32>
    tpu.vector_store %arg13[%c0_26, %c2, %c128_27], %25 {strides = array<i32>} : memref<1x8x512xf32, #tpu.memory_space<vmem>>, vector<1x6x128xf32>,
    %cst_28 = arith.constant 0.000000e+00 : f32
    %27 = vector.broadcast %cst_28 : f32 to vector<1x3x128xf32>
    %c0_29 = arith.constant 0 : index
    %c0_30 = arith.constant 0 : index
    %c256 = arith.constant 256 : index
    %28 = vector.load %arg13[%c0_29, %c0_30, %c256] : memref<1x8x512xf32, #tpu.memory_space<vmem>>, vector<1x3x128xf32>
    tpu.vector_store %arg13[%c0_29, %c0_30, %c256], %27 {strides = array<i32>} : memref<1x8x512xf32, #tpu.memory_space<vmem>>, vector<1x3x128xf32>,
    %29 = vector.extract_strided_slice %17 {offsets = [0, 0, 0], sizes = [1, 5, 128], strides = [1, 1, 1]} : vector<1x8x128xf32> to vector<1x5x128xf32>
    %c0_31 = arith.constant 0 : index
    %c3 = arith.constant 3 : index
    %c256_32 = arith.constant 256 : index
    %30 = vector.load %arg13[%c0_31, %c3, %c256_32] : memref<1x8x512xf32, #tpu.memory_space<vmem>>, vector<1x5x128xf32>
    tpu.vector_store %arg13[%c0_31, %c3, %c256_32], %29 {strides = array<i32>} : memref<1x8x512xf32, #tpu.memory_space<vmem>>, vector<1x5x128xf32>,
    %cst_33 = arith.constant 0.000000e+00 : f32
    %31 = vector.broadcast %cst_33 : f32 to vector<1x4x128xf32>
    %c0_34 = arith.constant 0 : index
    %c0_35 = arith.constant 0 : index
    %c384 = arith.constant 384 : index
    %32 = vector.load %arg13[%c0_34, %c0_35, %c384] : memref<1x8x512xf32, #tpu.memory_space<vmem>>, vector<1x4x128xf32>
    tpu.vector_store %arg13[%c0_34, %c0_35, %c384], %31 {strides = array<i32>} : memref<1x8x512xf32, #tpu.memory_space<vmem>>, vector<1x4x128xf32>,
    %33 = vector.extract_strided_slice %17 {offsets = [0, 0, 0], sizes = [1, 4, 128], strides = [1, 1, 1]} : vector<1x8x128xf32> to vector<1x4x128xf32>
    %c0_36 = arith.constant 0 : index
    %c4 = arith.constant 4 : index
    %c384_37 = arith.constant 384 : index
    %34 = vector.load %arg13[%c0_36, %c4, %c384_37] : memref<1x8x512xf32, #tpu.memory_space<vmem>>, vector<1x4x128xf32>
    tpu.vector_store %arg13[%c0_36, %c4, %c384_37], %33 {strides = array<i32>} : memref<1x8x512xf32, #tpu.memory_space<vmem>>, vector<1x4x128xf32>,
    %c0_38 = arith.constant 0 : index
    %c0_39 = arith.constant 0 : index
    %c0_40 = arith.constant 0 : index
    %35 = vector.load %arg13[%c0_38, %c0_39, %c0_40] : memref<1x8x512xf32, #tpu.memory_space<vmem>>, vector<1x8x512xf32>
    %36 = vector.shape_cast %35 : vector<1x8x512xf32> to vector<8x512xf32>
    %c0_41 = arith.constant 0 : index
    %c0_42 = arith.constant 0 : index
    %37 = vector.load %arg5[%c0_41, %c0_42] : memref<640x128xf32, #tpu.memory_space<vmem>>, vector<128x128xf32>
    %cst_43 = arith.constant dense<0.000000e+00> : vector<8x128xf32>
    %38 = tpu.matmul %18, %37, %cst_43 {dimension_numbers = #tpu.dot_dimension_numbers<[1], [0], [0], [1], [0, 0, 1, 1], [], []>} : vector<8x128xf32>, vector<128x128xf32>, vector<8x128xf32> -> vector<8x128xf32>
    %c128_44 = arith.constant 128 : index
    %c0_45 = arith.constant 0 : index
    %39 = vector.load %arg5[%c128_44, %c0_45] : memref<640x128xf32, #tpu.memory_space<vmem>>, vector<512x128xf32>
    %cst_46 = arith.constant dense<0.000000e+00> : vector<8x128xf32>
    %40 = tpu.matmul %36, %39, %cst_46 {dimension_numbers = #tpu.dot_dimension_numbers<[1], [0], [0], [1], [0, 0, 1, 1], [], []>} : vector<8x512xf32>, vector<512x128xf32>, vector<8x128xf32> -> vector<8x128xf32>
    %41 = arith.addf %38, %40 : vector<8x128xf32>
    %c0_47 = arith.constant 0 : index
    %c0_48 = arith.constant 0 : index
    %42 = vector.load %arg6[%c0_47, %c0_48] : memref<1x128xf32, #tpu.memory_space<vmem>>, vector<1x128xf32>
    %43 = vector.broadcast %42 : vector<1x128xf32> to vector<8x128xf32>
    %44 = arith.addf %41, %43 : vector<8x128xf32>
    %45 = arith.negf %44 : vector<8x128xf32>
    %46 = math.exp %45 : vector<8x128xf32>
    %cst_49 = arith.constant 1.000000e+00 : f32
    %47 = vector.broadcast %cst_49 : f32 to vector<8x128xf32>
    %48 = arith.addf %47, %46 : vector<8x128xf32>
    %49 = arith.divf %47, %48 : vector<8x128xf32>
    %50 = arith.mulf %44, %49 : vector<8x128xf32>
    %51 = vector.shape_cast %50 : vector<8x128xf32> to vector<1x8x128xf32>
    %52 = vector.shape_cast %51 : vector<1x8x128xf32> to vector<8x128xf32>
    %cst_50 = arith.constant 0.000000e+00 : f32
    %53 = vector.broadcast %cst_50 : f32 to vector<1x1x128xf32>
    %c0_51 = arith.constant 0 : index
    %c0_52 = arith.constant 0 : index
    %c0_53 = arith.constant 0 : index
    %54 = vector.load %arg13[%c0_51, %c0_52, %c0_53] : memref<1x8x512xf32, #tpu.memory_space<vmem>>, vector<1x1x128xf32>
    tpu.vector_store %arg13[%c0_51, %c0_52, %c0_53], %53 {strides = array<i32>} : memref<1x8x512xf32, #tpu.memory_space<vmem>>, vector<1x1x128xf32>,
    %55 = vector.extract_strided_slice %51 {offsets = [0, 0, 0], sizes = [1, 7, 128], strides = [1, 1, 1]} : vector<1x8x128xf32> to vector<1x7x128xf32>
    %c0_54 = arith.constant 0 : index
    %c1_55 = arith.constant 1 : index
    %c0_56 = arith.constant 0 : index
    %56 = vector.load %arg13[%c0_54, %c1_55, %c0_56] : memref<1x8x512xf32, #tpu.memory_space<vmem>>, vector<1x7x128xf32>
    tpu.vector_store %arg13[%c0_54, %c1_55, %c0_56], %55 {strides = array<i32>} : memref<1x8x512xf32, #tpu.memory_space<vmem>>, vector<1x7x128xf32>,
    %cst_57 = arith.constant 0.000000e+00 : f32
    %57 = vector.broadcast %cst_57 : f32 to vector<1x2x128xf32>
    %c0_58 = arith.constant 0 : index
    %c0_59 = arith.constant 0 : index
    %c128_60 = arith.constant 128 : index
    %58 = vector.load %arg13[%c0_58, %c0_59, %c128_60] : memref<1x8x512xf32, #tpu.memory_space<vmem>>, vector<1x2x128xf32>
    tpu.vector_store %arg13[%c0_58, %c0_59, %c128_60], %57 {strides = array<i32>} : memref<1x8x512xf32, #tpu.memory_space<vmem>>, vector<1x2x128xf32>,
    %59 = vector.extract_strided_slice %51 {offsets = [0, 0, 0], sizes = [1, 6, 128], strides = [1, 1, 1]} : vector<1x8x128xf32> to vector<1x6x128xf32>
    %c0_61 = arith.constant 0 : index
    %c2_62 = arith.constant 2 : index
    %c128_63 = arith.constant 128 : index
    %60 = vector.load %arg13[%c0_61, %c2_62, %c128_63] : memref<1x8x512xf32, #tpu.memory_space<vmem>>, vector<1x6x128xf32>
    tpu.vector_store %arg13[%c0_61, %c2_62, %c128_63], %59 {strides = array<i32>} : memref<1x8x512xf32, #tpu.memory_space<vmem>>, vector<1x6x128xf32>,
    %c0_64 = arith.constant 0 : index
    %c0_65 = arith.constant 0 : index
    %c0_66 = arith.constant 0 : index
    %61 = vector.load %arg13[%c0_64, %c0_65, %c0_66] : memref<1x8x512xf32, #tpu.memory_space<vmem>>, vector<1x8x256xf32>
    %62 = vector.shape_cast %61 : vector<1x8x256xf32> to vector<8x256xf32>
    %c0_67 = arith.constant 0 : index
    %c0_68 = arith.constant 0 : index
    %63 = vector.load %arg7[%c0_67, %c0_68] : memref<384x128xf32, #tpu.memory_space<vmem>>, vector<128x128xf32>
    %cst_69 = arith.constant dense<0.000000e+00> : vector<8x128xf32>
    %64 = tpu.matmul %52, %63, %cst_69 {dimension_numbers = #tpu.dot_dimension_numbers<[1], [0], [0], [1], [0, 0, 1, 1], [], []>} : vector<8x128xf32>, vector<128x128xf32>, vector<8x128xf32> -> vector<8x128xf32>
    %c128_70 = arith.constant 128 : index
    %c0_71 = arith.constant 0 : index
    %65 = vector.load %arg7[%c128_70, %c0_71] : memref<384x128xf32, #tpu.memory_space<vmem>>, vector<256x128xf32>
    %cst_72 = arith.constant dense<0.000000e+00> : vector<8x128xf32>
    %66 = tpu.matmul %62, %65, %cst_72 {dimension_numbers = #tpu.dot_dimension_numbers<[1], [0], [0], [1], [0, 0, 1, 1], [], []>} : vector<8x256xf32>, vector<256x128xf32>, vector<8x128xf32> -> vector<8x128xf32>
    %67 = arith.addf %64, %66 : vector<8x128xf32>
    %c0_73 = arith.constant 0 : index
    %c0_74 = arith.constant 0 : index
    %68 = vector.load %arg8[%c0_73, %c0_74] : memref<1x128xf32, #tpu.memory_space<vmem>>, vector<1x128xf32>
    %69 = vector.broadcast %68 : vector<1x128xf32> to vector<8x128xf32>
    %70 = arith.addf %67, %69 : vector<8x128xf32>
    %71 = arith.negf %70 : vector<8x128xf32>
    %72 = math.exp %71 : vector<8x128xf32>
    %cst_75 = arith.constant 1.000000e+00 : f32
    %73 = vector.broadcast %cst_75 : f32 to vector<8x128xf32>
    %74 = arith.addf %73, %72 : vector<8x128xf32>
    %75 = arith.divf %73, %74 : vector<8x128xf32>
    %76 = arith.mulf %70, %75 : vector<8x128xf32>
    %77 = vector.shape_cast %76 : vector<8x128xf32> to vector<1x8x128xf32>
    %78 = vector.shape_cast %77 : vector<1x8x128xf32> to vector<8x128xf32>
    %cst_76 = arith.constant 0.000000e+00 : f32
    %79 = vector.broadcast %cst_76 : f32 to vector<1x1x128xf32>
    %c0_77 = arith.constant 0 : index
    %c0_78 = arith.constant 0 : index
    %c0_79 = arith.constant 0 : index
    %80 = vector.load %arg13[%c0_77, %c0_78, %c0_79] : memref<1x8x512xf32, #tpu.memory_space<vmem>>, vector<1x1x128xf32>
    tpu.vector_store %arg13[%c0_77, %c0_78, %c0_79], %79 {strides = array<i32>} : memref<1x8x512xf32, #tpu.memory_space<vmem>>, vector<1x1x128xf32>,
    %81 = vector.extract_strided_slice %77 {offsets = [0, 0, 0], sizes = [1, 7, 128], strides = [1, 1, 1]} : vector<1x8x128xf32> to vector<1x7x128xf32>
    %c0_80 = arith.constant 0 : index
    %c1_81 = arith.constant 1 : index
    %c0_82 = arith.constant 0 : index
    %82 = vector.load %arg13[%c0_80, %c1_81, %c0_82] : memref<1x8x512xf32, #tpu.memory_space<vmem>>, vector<1x7x128xf32>
    tpu.vector_store %arg13[%c0_80, %c1_81, %c0_82], %81 {strides = array<i32>} : memref<1x8x512xf32, #tpu.memory_space<vmem>>, vector<1x7x128xf32>,
    %c0_83 = arith.constant 0 : index
    %c0_84 = arith.constant 0 : index
    %c0_85 = arith.constant 0 : index
    %83 = vector.load %arg13[%c0_83, %c0_84, %c0_85] : memref<1x8x512xf32, #tpu.memory_space<vmem>>, vector<1x8x128xf32>
    %84 = vector.shape_cast %83 : vector<1x8x128xf32> to vector<8x128xf32>
    %c0_86 = arith.constant 0 : index
    %c0_87 = arith.constant 0 : index
    %85 = vector.load %arg9[%c0_86, %c0_87] : memref<256x128xf32, #tpu.memory_space<vmem>>, vector<128x128xf32>
    %cst_88 = arith.constant dense<0.000000e+00> : vector<8x128xf32>
    %86 = tpu.matmul %78, %85, %cst_88 {dimension_numbers = #tpu.dot_dimension_numbers<[1], [0], [0], [1], [0, 0, 1, 1], [], []>} : vector<8x128xf32>, vector<128x128xf32>, vector<8x128xf32> -> vector<8x128xf32>
    %c128_89 = arith.constant 128 : index
    %c0_90 = arith.constant 0 : index
    %87 = vector.load %arg9[%c128_89, %c0_90] : memref<256x128xf32, #tpu.memory_space<vmem>>, vector<128x128xf32>
    %cst_91 = arith.constant dense<0.000000e+00> : vector<8x128xf32>
    %88 = tpu.matmul %84, %87, %cst_91 {dimension_numbers = #tpu.dot_dimension_numbers<[1], [0], [0], [1], [0, 0, 1, 1], [], []>} : vector<8x128xf32>, vector<128x128xf32>, vector<8x128xf32> -> vector<8x128xf32>
    %89 = arith.addf %86, %88 : vector<8x128xf32>
    %c0_92 = arith.constant 0 : index
    %c0_93 = arith.constant 0 : index
    %90 = vector.load %arg10[%c0_92, %c0_93] : memref<1x128xf32, #tpu.memory_space<vmem>>, vector<1x128xf32>
    %91 = vector.broadcast %90 : vector<1x128xf32> to vector<8x128xf32>
    %92 = arith.addf %89, %91 : vector<8x128xf32>
    %93 = arith.negf %92 : vector<8x128xf32>
    %94 = math.exp %93 : vector<8x128xf32>
    %cst_94 = arith.constant 1.000000e+00 : f32
    %95 = vector.broadcast %cst_94 : f32 to vector<8x128xf32>
    %96 = arith.addf %95, %94 : vector<8x128xf32>
    %97 = arith.divf %95, %96 : vector<8x128xf32>
    %98 = arith.mulf %92, %97 : vector<8x128xf32>
    %99 = vector.shape_cast %98 : vector<8x128xf32> to vector<1x8x128xf32>
    %100 = vector.extract_strided_slice %99 {offsets = [0, 0, 0], sizes = [1, 8, 32], strides = [1, 1, 1]} : vector<1x8x128xf32> to vector<1x8x32xf32>
    %c0_95 = arith.constant 0 : index
    %c0_96 = arith.constant 0 : index
    %c0_97 = arith.constant 0 : index
    %101 = vector.load %arg11[%c0_95, %c0_96, %c0_97] : memref<1x8x32xf32, #tpu.memory_space<vmem>>, vector<1x8x32xf32>
    tpu.vector_store %arg11[%c0_95, %c0_96, %c0_97], %100 {strides = array<i32>} : memref<1x8x32xf32, #tpu.memory_space<vmem>>, vector<1x8x32xf32>,
    return
  }
  func.func @transform_0(%arg0: i32, %arg1: i32) -> (i32, i32, i32) {
    %c0_i32 = arith.constant 0 : i32
    %c0_i32_0 = arith.constant 0 : i32
    return %arg0, %arg1, %c0_i32 : i32, i32, i32
  }
  func.func @transform_1(%arg0: i32, %arg1: i32) -> (i32, i32) {
    %c0_i32 = arith.constant 0 : i32
    %c0_i32_0 = arith.constant 0 : i32
    %c0_i32_1 = arith.constant 0 : i32
    return %c0_i32, %c0_i32_0 : i32, i32
  }
  func.func @transform_2(%arg0: i32, %arg1: i32) -> (i32, i32) {
    %c0_i32 = arith.constant 0 : i32
    %c0_i32_0 = arith.constant 0 : i32
    %c0_i32_1 = arith.constant 0 : i32
    return %c0_i32, %c0_i32_0 : i32, i32
  }
  func.func @transform_3(%arg0: i32, %arg1: i32) -> (i32, i32) {
    %c0_i32 = arith.constant 0 : i32
    %c0_i32_0 = arith.constant 0 : i32
    %c0_i32_1 = arith.constant 0 : i32
    return %c0_i32, %c0_i32_0 : i32, i32
  }
  func.func @transform_4(%arg0: i32, %arg1: i32) -> (i32, i32) {
    %c0_i32 = arith.constant 0 : i32
    %c0_i32_0 = arith.constant 0 : i32
    %c0_i32_1 = arith.constant 0 : i32
    return %c0_i32, %c0_i32_0 : i32, i32
  }
  func.func @transform_5(%arg0: i32, %arg1: i32) -> (i32, i32) {
    %c0_i32 = arith.constant 0 : i32
    %c0_i32_0 = arith.constant 0 : i32
    %c0_i32_1 = arith.constant 0 : i32
    return %c0_i32, %c0_i32_0 : i32, i32
  }
  func.func @transform_6(%arg0: i32, %arg1: i32) -> (i32, i32) {
    %c0_i32 = arith.constant 0 : i32
    %c0_i32_0 = arith.constant 0 : i32
    %c0_i32_1 = arith.constant 0 : i32
    return %c0_i32, %c0_i32_0 : i32, i32
  }
  func.func @transform_7(%arg0: i32, %arg1: i32) -> (i32, i32) {
    %c0_i32 = arith.constant 0 : i32
    %c0_i32_0 = arith.constant 0 : i32
    %c0_i32_1 = arith.constant 0 : i32
    return %c0_i32, %c0_i32_0 : i32, i32
  }
  func.func @transform_8(%arg0: i32, %arg1: i32) -> (i32, i32) {
    %c0_i32 = arith.constant 0 : i32
    %c0_i32_0 = arith.constant 0 : i32
    %c0_i32_1 = arith.constant 0 : i32
    return %c0_i32, %c0_i32_0 : i32, i32
  }
  func.func @transform_9(%arg0: i32, %arg1: i32) -> (i32, i32, i32) {
    %c0_i32 = arith.constant 0 : i32
    %c0_i32_0 = arith.constant 0 : i32
    return %arg0, %arg1, %c0_i32 : i32, i32, i32
  }
}

</mosaic_0001>

<bundles_post_ra>
// kernel: tpu_custom_call.1
= control target key start
LH: loop header
LB: loop body
LE: loop exit
PB: predicated region body
PF: predicated region fallthrough
CT: control target
= control target key end

     0   :  { %s1753_s0 = inlined_call_operand.hbm [shape: f32[2,8,32], index: 0, kind: input, shape index: {}]   ;;  %s1754_s1 = inlined_call_operand.hbm [shape: f32[128,128], index: 1, kind: input, shape index: {}]   ;;  %s1755_s2 = inlined_call_operand.vmem [shape: f32[1,128], index: 2, kind: input, shape index: {}]   ;;  %s1756_s3 = inlined_call_operand.hbm [shape: f32[640,128], index: 3, kind: input, shape index: {}]   ;;  %s1757_s4 = inlined_call_operand.vmem [shape: f32[1,128], index: 4, kind: input, shape index: {}]   ;;  %s1758_s5 = inlined_call_operand.hbm [shape: f32[384,128], index: 5, kind: input, shape index: {}]   ;;  %s1759_s6 = inlined_call_operand.vmem [shape: f32[1,128], index: 6, kind: input, shape index: {}]   ;;  %s1760_s7 = inlined_call_operand.hbm [shape: f32[256,128], index: 7, kind: input, shape index: {}]   ;;  %s1761_s8 = inlined_call_operand.vmem [shape: f32[1,128], index: 8, kind: input, shape index: {}]   ;;  %s1762_s9 = inlined_call_operand.hbm [shape: f32[2,8,32], index: 9, kind: output, shape index: {}]  }
   0x1   :  { %1764 = sst [smem:[#allocation18_spill]] %s1754_s1 }
   0x2   :  { %1765 = sst [smem:[#allocation19_spill]] %s1756_s3 }
   0x3   :  { %1766 = sst [smem:[#allocation20_spill]] %s1758_s5 }
   0x4   :  { %14 = vsyncpa [#allocation5], 0 }
   0x5   :  { %16 = vsyncpa [#allocation5 + $0x1], 0 }
   0x6   :  { %17 = vsyncpa [#allocation8], 0 }
   0x7   :  { %18 = vsyncpa [#allocation11], 0 }
   0x8   :  { %19 = vsyncpa [#allocation6], 0 }
   0x9   :  { %21 = vsyncpa [#allocation6 + $0x1], 0  ;;  %s1557_s30 = smov 0   ;;  %s1559_s10 = smov 0  }
   0xa   :  { %s1561_s11 = smov 0   ;;  %s1563_s12 = smov 0  }
   0xb   :  { %s1565_s13 = smov 0   ;;  %s1567_s14 = smov 0  }
   0xc LB: > { %s1763_s15 = sadd.s32 4294967295, %s1498_s14   ;;  %p1109_p0 = scmp.ge.s32.totalorder %s1498_s14, 1  ;;  %s1498_s14 = sphi %s1567_s14, %s27_s14   ;;  %s1494_s13 = sphi %s1565_s13, %s1781_s13   ;;  %s1490_s12 = sphi %s1563_s12, %s1780_s12   ;;  %s1486_s11 = sphi %s1561_s11, %s1779_s11   ;;  %s1482_s10 = sphi %s1559_s10, %s1778_s10   ;;  %s1478_s30 = sphi %s1557_s30, %s1777_s30  }
   0xd   : > { %p1591_p1 = scmp.eq.s32.totalorder %s1763_s15, 0  ;;  %p268_p2 = scmp.lt.s32.totalorder %s1498_s14, 3 }
   0xe   : > { %s1768_s1 = sld [smem:[#allocation18_spill]]  ;;  %s1500_s21 = smov [#allocation7]  }
   0xf   : > { %p1599_p3 = pnand %p1109_p0, %p268_p2  ;;  %s281_s22 = sshll.u32 %s1500_s21, 4  ;;  %s282_s22 = int_to_ptr.vmem [resolvable:$true] %s281_s22 }
  0x10   : > { %p1114_p6 = scmp.ge.s32.totalorder %s1498_s14, 2  ;;  %s1771_s5 = sld [smem:[#allocation20_spill]] }
  0x11   : > { %p1152_p4 = pneg %p1599_p3  ;;  %s1501_s27 = smov 128  }
  0x12   : > { %s1502_s28 = smov 8   ;;  %s1503_s29 = smov [#allocation10]  }
  0x13   : > { %p1607_p5 = pnand %p1152_p4, %p1591_p1  ;;  %s315_s17 = sshll.u32 %s1503_s29, 4  ;;  %s316_s17 = int_to_ptr.vmem [resolvable:$true] %s315_s17 }
  0x14   : > { %s279_s19 = sshll.u32 %s1768_s1, 4  ;;  %s1772_s3 = sld [smem:[#allocation19_spill]]  ;;  %s280_s19 = int_to_ptr.hbm [resolvable:$true] %s279_s19 }
  0x15   : > { %1155 = dma.hbm_to_vmem [thread:$0]  (!%p1607_p5), %s280_s19, 2048, %s282_s22, [#allocation8], %s1501_s27, %s1501_s27, %s1502_s28  }
  0x16   : > { %s313_s26 = sshll.u32 %s1771_s5, 4  ;;  %s330_s19 = sshll.u32 %s1760_s7, 4  ;;  %s314_s26 = int_to_ptr.hbm [resolvable:$true] %s313_s26  ;;  %s331_s19 = int_to_ptr.hbm [resolvable:$true] %s330_s19 }
  0x17   : > { %1161 = dma.hbm_to_vmem [thread:$0]  (!%p1607_p5), %s314_s26, 6144, %s316_s17, [#allocation11], %s1501_s27, %s1501_s27, %s1502_s28  }
  0x18   : > { %s1504_s22 = smov [#allocation9]   ;;  %s1505_s18 = smov [#allocation12]  }
  0x19   : > { %s298_s29 = sshll.u32 %s1504_s22, 4  ;;  %s332_s21 = sshll.u32 %s1505_s18, 4  ;;  %s299_s29 = int_to_ptr.vmem [resolvable:$true] %s298_s29  ;;  %s333_s21 = int_to_ptr.vmem [resolvable:$true] %s332_s21 }
  0x1a   : > { %s296_s15 = sshll.u32 %s1772_s3, 4  ;;  %s39_s26 = sadd.s32 1, %s1494_s13  ;;  %s297_s15 = int_to_ptr.hbm [resolvable:$true] %s296_s15 }
  0x1b   : > { %1158 = dma.hbm_to_vmem [thread:$0]  (!%p1607_p5), %s297_s15, 10240, %s299_s29, [#allocation8], %s1501_s27, %s1501_s27, %s1502_s28  }
  0x1c   : > { %1164 = dma.hbm_to_vmem [thread:$0]  (!%p1607_p5), %s331_s19, 4096, %s333_s21, [#allocation11], %s1501_s27, %s1501_s27, %s1502_s28  }
  0x1d   : > { %s1108_s17 = sadd.s32 4294967294, %s1498_s14   ;;  %p41_p7 = scmp.ge.s32.totalorder %s39_s26, 2 }
  0x1e   : > { %s48_s24 = sadd.s32 1, %s1486_s11  ;;  %p55_p8 = scmp.ne.s32.totalorder %s1486_s11, %s1482_s10 }
  0x1f   : > { %s1783_s26 = smov (%p41_p7, %s39_s26), 0  ;;  %p56_p9 = scmp.eq.s32.totalorder %s1498_s14, 0 }
  0x20   : > { %p61_p10 = scmp.ne.s32.totalorder %s1482_s10, %s1478_s30  ;;  %s43_s15 = ssub.s32 %s1494_s13, %s1783_s26 }
  0x21   : > { %s1773_s25 = sadd.s32 4294967295, %s1498_s14   ;;  %p46_p12 = scmp.eq.s32.totalorder %s43_s15, 0 }
  0x22   : > { %p255_p11 = scmp.eq.s32.totalorder %s1773_s25, 1  ;;  %p1645_p13 = por %p1591_p1, %p61_p10 }
  0x23   : > { %p261_p2 = scmp.eq.s32.totalorder %s1108_s17, 1  ;;  %p57_p4 = por %p56_p9, %p55_p8 }
  0x24   : > { %p1649_p0 = por %p255_p11, %p55_p8  ;;  %s349_s22 = sand.u32 1, %s1486_s11  }
  0x25   : > { %s1654_s28 = scalar_select %p46_p12, %s1486_s11, %s48_s24  }
  0x26   : > { %p1656_p5 = por %p261_p2, %p61_p10  ;;  %s1116_s29 = sshll.u32 %s1494_s13, 3 }
  0x27   : > { %p1177_p7 = scmp.lt.s32.totalorder %s1498_s14, 2  ;;  %s1115_s18 = sshll.u32 %s349_s22, 3 }
  0x28   : > { %s358_s25 = scalar_lea.hbm %s1753_s0, %s1116_s29  ;;  %s353_s3 = scalar_lea.vmem [#allocation4], %s1115_s18 }
  0x29   : > { %s360_s1 = sshll.u32 %s358_s25, 4  ;;  %s362_s5 = sshll.u32 %s353_s3, 4  ;;  %s361_s1 = int_to_ptr.hbm [resolvable:$true] %s360_s1  ;;  %s363_s5 = int_to_ptr.vmem [resolvable:$true] %s362_s5 }
  0x2a   : > { %p1166_p11 = pnand %p1177_p7, %p57_p4  ;;  %s350_s17 = scalar_lea.sflag [#allocation5], %s349_s22 }
  0x2b   : > { %371 = sbr.rel (%p1599_p3) target bundleno = 778 (0x30a), region = 56  ;;  %s1669_s24 = sand.u32 (!%p1599_p3), 1, %s1482_s10  }
  0x2c   : > { %1168 = dma.hbm_to_vmem [thread:$0]  (!%p1166_p11), %s361_s1, 128, %s363_s5, %s350_s17  }
  0x2d   : > { %s1118_s21 = sshll.u32 (!%p1599_p3), %s1669_s24, 3  ;;  %s374_s29 = scalar_lea.sflag (!%p1599_p3), [#allocation5], %s1669_s24 }
  0x2e   : > { %s377_s18 = scalar_lea.vmem (!%p1599_p3), [#allocation4], %s1118_s21 }
  0x30   : > { %1461 = dma.done.wait (%p1645_p13), %s374_s29, 128  }
  0x31   : > { %1463 = vsyncadd (%p1645_p13), %s374_s29, 4294967168 }
  0x32   : > { %1465 = dma.done.wait (%p1591_p1), [#allocation8], 12288  }
  0x33   : > { %1467 = vsyncadd (%p1591_p1), [#allocation8], 4294955008 }
  0x34   : > { %1469 = dma.done.wait (%p1591_p1), [#allocation11], 10240  }
  0x35   : > { %1471 = vsyncadd (%p1591_p1), [#allocation11], 4294957056  ;;  %v1506_v0 = vmov 0.0   ;;  %v453_v1 = vld [vmem:[#allocation7 + $0x78] sm:$0xff]  ;;  %v452_v2 = vld [vmem:[#allocation7 + $0x70] sm:$0xff]  ;;  %vm435_vm0 = vcmask 261120  }
  0x36   : > { %433 = vst [vmem:[#allocation2] sm:$0xff] %v1506_v0  ;;  %458 = vmatpush.msra.mxu0 %v453_v1  ;;  %v451_v3 = vld [vmem:[#allocation7 + $0x68] sm:$0xff]  ;;  %v450_v4 = vld [vmem:[#allocation7 + $0x60] sm:$0xff]  ;;  %v434_v5 = vld [vmem:[%s377_s18] sm:$0xff]  ;;  %s1129_s25 = sshll.u32 %s1490_s12, 3  ;;  %s432_s1 = scalar_lea.vmem [#allocation13], %s1118_s21 }
  0x37   : > { %498 = vst [vmem:[#allocation3 + $0x10] sm:$0x1] %v1506_v0  ;;  %v550_v6 = vld [vmem:[#allocation9 + $0xf8] sm:$0xff]  ;;  %v549_v8 = vld [vmem:[#allocation9 + $0xf0] sm:$0xff]  ;;  %v548_v9 = vld [vmem:[#allocation9 + $0xe8] sm:$0xff]  ;;  %s984_s18 = scalar_lea.hbm %s1762_s9, %s1129_s25  ;;  %s986_s3 = sshll.u32 %s432_s1, 4  ;;  %s987_s3 = int_to_ptr.vmem [resolvable:$true] %s986_s3 }
  0x38   : > { %503 = vst [vmem:[#allocation3] sm:$0x3] %v1506_v0  ;;  %459 = vmatpush.msra.mxu0 %v452_v2  ;;  %v449_v7 = vld [vmem:[#allocation7 + $0x58] sm:$0xff]  ;;  %599 = vmatpush.msra.mxu1 %v550_v6  ;;  %v448_v10 = vld [vmem:[#allocation7 + $0x50] sm:$0xff]  ;;  %v547_v11 = vld [vmem:[#allocation9 + $0xe0] sm:$0xff]  ;;  %s988_s5 = sshll.u32 %s984_s18, 4  ;;  %s989_s5 = int_to_ptr.hbm [resolvable:$true] %s988_s5 }
  0x39   : > { %507 = vst [vmem:[#allocation3 + $0x18] sm:$0x7] %v1506_v0  ;;  %v447_v12 = vld [vmem:[#allocation7 + $0x48] sm:$0xff]  ;;  %v546_v13 = vld [vmem:[#allocation9 + $0xd8] sm:$0xff]  ;;  %v446_v14 = vld [vmem:[#allocation7 + $0x40] sm:$0xff]  ;;  %s973_s12 = scalar_lea.sflag [#allocation6], %s1669_s24 }
  0x3a   : > { %511 = vst [vmem:[#allocation3 + $0x8] sm:$0xf] %v1506_v0  ;;  %460 = vmatpush.msra.mxu0 %v451_v3  ;;  %600 = vmatpush.msra.mxu1 %v549_v8  ;;  %v545_v15 = vld [vmem:[#allocation9 + $0xd0] sm:$0xff]  ;;  %v445_v16 = vld [vmem:[#allocation7 + $0x38] sm:$0xff]  ;;  %v443_v18 = vld [vmem:[#allocation7 + $0x28] sm:$0xff]  ;;  %s1422_s16 = sshra.s32 %s989_s5, 4  ;;  %s1423_s16 = int_to_ptr.hbm [resolvable:$true] %s1422_s16 }
  0x3b   : > { %436 = vst.msk [vmem:[#allocation2] sm:$0xff] %vm435_vm0, %v434_v5  ;;  %v444_v17 = vld [vmem:[#allocation7 + $0x30] sm:$0xff]  ;;  %v442_v19 = vld [vmem:[#allocation7 + $0x20] sm:$0xff]  ;;  %v441_v20 = vld [vmem:[#allocation7 + $0x18] sm:$0xff]  ;;  %s1424_s20 = scalar_lea.hbm %s1423_s16, 8  ;;  %s1428_s22 = scalar_lea.hbm %s1762_s9, 16 }
  0x3c   : > { %461 = vmatpush.msra.mxu0 %v450_v4  ;;  %601 = vmatpush.msra.mxu1 %v548_v9  ;;  %v440_v21 = vld [vmem:[#allocation7 + $0x10] sm:$0xff]  ;;  %v439_v22 = vld [vmem:[#allocation7 + $0x8] sm:$0xff]  ;;  %v438_v23 = vld [vmem:[#allocation7] sm:$0xff]  ;;  %p1425_p1 = scmp.ne.s32.totalorder %s1423_s16, %s1424_s20  ;;  %p1429_p9 = scmp.lt.s32.totalorder %s1423_s16, %s1762_s9 }
  0x3d   : > { %v544_v25 = vld [vmem:[#allocation9 + $0xc8] sm:$0xff]  ;;  %v543_v26 = vld [vmem:[#allocation9 + $0xc0] sm:$0xff]  ;;  %v542_v27 = vld [vmem:[#allocation9 + $0xb8] sm:$0xff]  ;;  %p1430_p10 = scmp.lt.s32.totalorder %s1428_s22, %s1424_s20 }
  0x3e   : > { %462 = vmatpush.msra.mxu0 %v449_v7  ;;  %602 = vmatpush.msra.mxu1 %v547_v11  ;;  %v541_v28 = vld [vmem:[#allocation9 + $0xb0] sm:$0xff]  ;;  %v540_v29 = vld [vmem:[#allocation9 + $0xa8] sm:$0xff]  ;;  %v539_v30 = vld [vmem:[#allocation9 + $0xa0] sm:$0xff]  ;;  %p1426_p3 = pnand %p1425_p1, %p1649_p0 }
  0x3f   : > { %v566_v31 = vld [vmem:[#allocation9 + $0x178] sm:$0xff]  ;;  %v565_v35 = vld [vmem:[#allocation9 + $0x170] sm:$0xff]  ;;  %v564_v39 = vld [vmem:[#allocation9 + $0x168] sm:$0xff]  ;;  %p1431_p12 = por %p1430_p10, %p1429_p9 }
  0x40   : > { %463 = vmatpush.msra.mxu0 %v448_v10  ;;  %603 = vmatpush.msra.mxu1 %v546_v13  ;;  %v582_v32 = vld [vmem:[#allocation9 + $0x1f8] sm:$0xff]  ;;  %v581_v36 = vld [vmem:[#allocation9 + $0x1f0] sm:$0xff]  ;;  %v580_v40 = vld [vmem:[#allocation9 + $0x1e8] sm:$0xff]  ;;  %p1427_p8 = pneg %p1426_p3 }
  0x41   : > { %v598_v33 = vld [vmem:[#allocation9 + $0x278] sm:$0xff]  ;;  %619 = vmatpush.msra.mxu2 %v566_v31  ;;  %639 = vmatpush.msra.mxu3 %v582_v32  ;;  %v597_v37 = vld [vmem:[#allocation9 + $0x270] sm:$0xff]  ;;  %v596_v41 = vld [vmem:[#allocation9 + $0x268] sm:$0xff] }
  0x42   : > { %464 = vmatpush.msra.mxu0 %v447_v12  ;;  %604 = vmatpush.msra.mxu1 %v545_v15  ;;  %v437_v24 = vld [vmem:[#allocation2] sm:$0xff]  ;;  %v538_v34 = vld [vmem:[#allocation9 + $0x98] sm:$0xff]  ;;  %v537_v38 = vld [vmem:[#allocation9 + $0x90] sm:$0xff]  ;;  %p1432_p13 = pnand %p1431_p12, %p1427_p8 }
  0x43   : > { %620 = vmatpush.msra.mxu2 %v565_v35  ;;  %640 = vmatpush.msra.mxu3 %v581_v36  ;;  %v536_v42 = vld [vmem:[#allocation9 + $0x88] sm:$0xff]  ;;  %v563_v43 = vld [vmem:[#allocation9 + $0x160] sm:$0xff]  ;;  %v562_v47 = vld [vmem:[#allocation9 + $0x158] sm:$0xff] }
  0x44   : > { %465 = vmatpush.msra.mxu0 %v446_v14  ;;  %605 = vmatpush.msra.mxu1 %v544_v25  ;;  %v579_v44 = vld [vmem:[#allocation9 + $0x1e0] sm:$0xff]  ;;  %v578_v48 = vld [vmem:[#allocation9 + $0x1d8] sm:$0xff]  ;;  %v561_v51 = vld [vmem:[#allocation9 + $0x150] sm:$0xff] }
  0x45   : > { %621 = vmatpush.msra.mxu2 %v564_v39  ;;  %641 = vmatpush.msra.mxu3 %v580_v40  ;;  %v595_v45 = vld [vmem:[#allocation9 + $0x260] sm:$0xff]  ;;  %v594_v49 = vld [vmem:[#allocation9 + $0x258] sm:$0xff]  ;;  %v577_v52 = vld [vmem:[#allocation9 + $0x1d0] sm:$0xff] }
  0x46   : > { %466 = vmatpush.msra.mxu0 %v445_v16  ;;  %606 = vmatpush.msra.mxu1 %v543_v26  ;;  %v535_v46 = vld [vmem:[#allocation9 + $0x80] sm:$0xff]  ;;  %v534_v50 = vld [vmem:[#allocation9 + $0x78] sm:$0xff]  ;;  %v593_v53 = vld [vmem:[#allocation9 + $0x250] sm:$0xff] }
  0x47   : > { %622 = vmatpush.msra.mxu2 %v563_v43  ;;  %642 = vmatpush.msra.mxu3 %v579_v44  ;;  %v533_v54 = vld [vmem:[#allocation9 + $0x70] sm:$0xff]  ;;  %v560_v55 = vld [vmem:[#allocation9 + $0x148] sm:$0xff]  ;;  %v559_v59 = vld [vmem:[#allocation9 + $0x140] sm:$0xff] }
  0x48   : > { %467 = vmatpush.msra.mxu0 %v444_v17  ;;  %607 = vmatpush.msra.mxu1 %v542_v27  ;;  %v576_v56 = vld [vmem:[#allocation9 + $0x1c8] sm:$0xff]  ;;  %v575_v60 = vld [vmem:[#allocation9 + $0x1c0] sm:$0xff]  ;;  %v558_v1 = vld [vmem:[#allocation9 + $0x138] sm:$0xff] }
  0x49   : > { %623 = vmatpush.msra.mxu2 %v562_v47  ;;  %643 = vmatpush.msra.mxu3 %v578_v48  ;;  %v592_v57 = vld [vmem:[#allocation9 + $0x248] sm:$0xff]  ;;  %v591_v61 = vld [vmem:[#allocation9 + $0x240] sm:$0xff]  ;;  %v574_v2 = vld [vmem:[#allocation9 + $0x1b8] sm:$0xff] }
  0x4a   : > { %468 = vmatpush.msra.mxu0 %v443_v18  ;;  %608 = vmatpush.msra.mxu1 %v541_v28  ;;  %v532_v58 = vld [vmem:[#allocation9 + $0x68] sm:$0xff]  ;;  %v531_v63 = vld [vmem:[#allocation9 + $0x60] sm:$0xff]  ;;  %v590_v3 = vld [vmem:[#allocation9 + $0x238] sm:$0xff] }
  0x4b   : > { %624 = vmatpush.msra.mxu2 %v561_v51  ;;  %644 = vmatpush.msra.mxu3 %v577_v52  ;;  %v1238_v62 = vld [vmem:[%s1755_s2] ss:$0 sm:$0xff]  ;;  %v530_v4 = vld [vmem:[#allocation9 + $0x58] sm:$0xff]  ;;  %v557_v6 = vld [vmem:[#allocation9 + $0x130] sm:$0xff] }
  0x4c   : > { %469 = vmatpush.msra.mxu0 %v442_v19  ;;  %609 = vmatpush.msra.mxu1 %v540_v29  ;;  %v573_v7 = vld [vmem:[#allocation9 + $0x1b0] sm:$0xff]  ;;  %v556_v11 = vld [vmem:[#allocation9 + $0x128] sm:$0xff]  ;;  %v555_v16 = vld [vmem:[#allocation9 + $0x120] sm:$0xff] }
  0x4d   : > { %625 = vmatpush.msra.mxu2 %v560_v55  ;;  %645 = vmatpush.msra.mxu3 %v576_v56  ;;  %v589_v8 = vld [vmem:[#allocation9 + $0x230] sm:$0xff]  ;;  %v572_v12 = vld [vmem:[#allocation9 + $0x1a8] sm:$0xff]  ;;  %v571_v17 = vld [vmem:[#allocation9 + $0x1a0] sm:$0xff] }
  0x4e   : > { %470 = vmatpush.msra.mxu0 %v441_v20  ;;  %610 = vmatpush.msra.mxu1 %v539_v30  ;;  %v529_v10 = vld [vmem:[#allocation9 + $0x50] sm:$0xff]  ;;  %v588_v13 = vld [vmem:[#allocation9 + $0x228] sm:$0xff]  ;;  %v587_v18 = vld [vmem:[#allocation9 + $0x220] sm:$0xff] }
  0x4f   : > { %626 = vmatpush.msra.mxu2 %v559_v59  ;;  %646 = vmatpush.msra.mxu3 %v575_v60  ;;  %v528_v15 = vld [vmem:[#allocation9 + $0x48] sm:$0xff]  ;;  %v527_v19 = vld [vmem:[#allocation9 + $0x40] sm:$0xff]  ;;  %v554_v20 = vld [vmem:[#allocation9 + $0x118] sm:$0xff] }
  0x50   : > { %471 = vmatpush.msra.mxu0 %v440_v21  ;;  %611 = vmatpush.msra.mxu1 %v538_v34  ;;  %v570_v21 = vld [vmem:[#allocation9 + $0x198] sm:$0xff]  ;;  %v569_v25 = vld [vmem:[#allocation9 + $0x190] sm:$0xff]  ;;  %v552_v28 = vld [vmem:[#allocation9 + $0x108] sm:$0xff] }
  0x51   : > { %627 = vmatpush.msra.mxu2 %v558_v1  ;;  %647 = vmatpush.msra.mxu3 %v574_v2  ;;  %v585_v26 = vld [vmem:[#allocation9 + $0x210] sm:$0xff]  ;;  %v568_v29 = vld [vmem:[#allocation9 + $0x188] sm:$0xff]  ;;  %v551_v32 = vld [vmem:[#allocation9 + $0x100] sm:$0xff] }
  0x52   : > { %472 = vmatpush.msra.mxu0 %v439_v22  ;;  %612 = vmatpush.msra.mxu1 %v537_v38  ;;  %v586_v22 = vld [vmem:[#allocation9 + $0x218] sm:$0xff]  ;;  %v525_v27 = vld [vmem:[#allocation9 + $0x30] sm:$0xff]  ;;  %v584_v30 = vld [vmem:[#allocation9 + $0x208] sm:$0xff] }
  0x53   : > { %628 = vmatpush.msra.mxu2 %v557_v6  ;;  %648 = vmatpush.msra.mxu3 %v573_v7  ;;  %v524_v31 = vld [vmem:[#allocation9 + $0x28] sm:$0xff]  ;;  %v583_v35 = vld [vmem:[#allocation9 + $0x200] sm:$0xff]  ;;  %v522_v38 = vld [vmem:[#allocation9 + $0x18] sm:$0xff] }
  0x54   : > { %473 = vmatpush.msra.mxu0 %v438_v23  ;;  %613 = vmatpush.msra.mxu1 %v536_v42  ;;  %v526_v23 = vld [vmem:[#allocation9 + $0x38] sm:$0xff]  ;;  %v523_v36 = vld [vmem:[#allocation9 + $0x20] sm:$0xff]  ;;  %v521_v39 = vld [vmem:[#allocation9 + $0x10] sm:$0xff] }
  0x55   : > { %474 = vmatmul.f32.vlgmr.msra.gmra.mxu0 %v437_v24  ;;  %629 = vmatpush.msra.mxu2 %v556_v11  ;;  %v553_v24 = vld [vmem:[#allocation9 + $0x110] sm:$0xff]  ;;  %v520_v40 = vld [vmem:[#allocation9 + $0x8] sm:$0xff]  ;;  %v747_v1 = vld [vmem:[#allocation10 + $0x60] sm:$0xff] }
  0x56   : > { %659 = vmatpush.msrb.mxu0 %v598_v33  ;;  %614 = vmatpush.msra.mxu1 %v535_v46  ;;  %v567_v33 = vld [vmem:[#allocation9 + $0x180] sm:$0xff]  ;;  %v746_v2 = vld [vmem:[#allocation10 + $0x58] sm:$0xff]  ;;  %v765_v6 = vld [vmem:[#allocation10 + $0xf0] sm:$0xff] }
  0x57   : > { %649 = vmatpush.msra.mxu3 %v572_v12  ;;  %630 = vmatpush.msra.mxu2 %v555_v16  ;;  %v781_v7 = vld [vmem:[#allocation10 + $0x170] sm:$0xff]  ;;  %v743_v11 = vld [vmem:[#allocation10 + $0x40] sm:$0xff]  ;;  %v762_v16 = vld [vmem:[#allocation10 + $0xd8] sm:$0xff] }
  0x58   : > { %660 = vmatpush.msrb.mxu0 %v597_v37  ;;  %679 = vmatpush.msrb.mxu1 %v534_v50  ;;  %v763_v12 = vld [vmem:[#allocation10 + $0xe0] sm:$0xff] }
  0x59   : > { %650 = vmatpush.msra.mxu3 %v571_v17  ;;  %631 = vmatpush.msra.mxu2 %v554_v20  ;;  %v778_v17 = vld [vmem:[#allocation10 + $0x158] sm:$0xff]  ;;  %v777_v20 = vld [vmem:[#allocation10 + $0x150] sm:$0xff] }
  0x5a   : > { %661 = vmatpush.msrb.mxu0 %v596_v41  ;;  %680 = vmatpush.msrb.mxu1 %v533_v54  ;;  %v519_v41 = vld [vmem:[#allocation9] sm:$0xff] }
  0x5b   : > { %651 = vmatpush.msra.mxu3 %v570_v21  ;;  %632 = vmatpush.msra.mxu2 %v553_v24  ;;  %v740_v21 = vld [vmem:[#allocation10 + $0x28] sm:$0xff] }
  0x5c   : > { %662 = vmatpush.msrb.mxu0 %v595_v45  ;;  %681 = vmatpush.msrb.mxu1 %v532_v58  ;;  %v760_v24 = vld [vmem:[#allocation10 + $0xc8] sm:$0xff] }
  0x5d   : > { %652 = vmatpush.msra.mxu3 %v569_v25  ;;  %633 = vmatpush.msra.mxu2 %v552_v28  ;;  %v776_v25 = vld [vmem:[#allocation10 + $0x148] sm:$0xff] }
  0x5e   : > { %663 = vmatpush.msrb.mxu0 %v594_v49  ;;  %682 = vmatpush.msrb.mxu1 %v531_v63  ;;  %v748_v63 = vld [vmem:[#allocation10 + $0x68] sm:$0xff] }
  0x5f   : > { %653 = vmatpush.msra.mxu3 %v568_v29  ;;  %634 = vmatpush.msra.mxu2 %v551_v32  ;;  %v759_v29 = vld [vmem:[#allocation10 + $0xc0] sm:$0xff] }
  0x60   : > { %664 = vmatpush.msrb.mxu0 %v593_v53  ;;  %683 = vmatpush.msrb.mxu1 %v530_v4  ;;  %v782_v4 = vld [vmem:[#allocation10 + $0x178] sm:$0xff] }
  0x61   : > { %654 = vmatpush.msra.mxu3 %v567_v33  ;;  %v1239_v33 = vld [vmem:[%s1757_s4] ss:$0 sm:$0xff] }
  0x62   : > { %665 = vmatpush.msrb.mxu0 %v592_v57  ;;  %684 = vmatpush.msrb.mxu1 %v529_v10  ;;  %v780_v10 = vld [vmem:[#allocation10 + $0x168] sm:$0xff] }
  0x63   : > { %803 = vmatpush.msrb.mxu3 %v782_v4 }
  0x64   : > { %666 = vmatpush.msrb.mxu0 %v591_v61  ;;  %685 = vmatpush.msrb.mxu1 %v528_v15  ;;  %v750_v61 = vld [vmem:[#allocation10 + $0x78] sm:$0xff] }
  0x65   : > { %804 = vmatpush.msrb.mxu3 %v781_v7 }
  0x66   : > { %667 = vmatpush.msrb.mxu0 %v590_v3  ;;  %686 = vmatpush.msrb.mxu1 %v527_v19  ;;  %v766_v3 = vld [vmem:[#allocation10 + $0xf8] sm:$0xff]  ;;  %v761_v19 = vld [vmem:[#allocation10 + $0xd0] sm:$0xff] }
  0x67   : > { %783 = vmatpush.msrb.mxu2 %v766_v3  ;;  %805 = vmatpush.msrb.mxu3 %v780_v10 }
  0x68   : > { %668 = vmatpush.msrb.mxu0 %v589_v8  ;;  %687 = vmatpush.msrb.mxu1 %v526_v23  ;;  %v744_v8 = vld [vmem:[#allocation10 + $0x48] sm:$0xff] }
  0x69   : > { %784 = vmatpush.msrb.mxu2 %v765_v6 }
  0x6a   : > { %669 = vmatpush.msrb.mxu0 %v588_v13  ;;  %688 = vmatpush.msrb.mxu1 %v525_v27  ;;  %v779_v13 = vld [vmem:[#allocation10 + $0x160] sm:$0xff] }
  0x6b   : > { %806 = vmatpush.msrb.mxu3 %v779_v13  ;;  %v888_v13 = vld [vmem:[#allocation12 + $0x70] sm:$0xff] }
  0x6c   : > { %670 = vmatpush.msrb.mxu0 %v587_v18  ;;  %689 = vmatpush.msrb.mxu1 %v524_v31  ;;  %v741_v18 = vld [vmem:[#allocation10 + $0x30] sm:$0xff]  ;;  %v738_v31 = vld [vmem:[#allocation10 + $0x18] sm:$0xff] }
  0x6d   : > { %807 = vmatpush.msrb.mxu3 %v778_v17  ;;  %v905_v17 = vld [vmem:[#allocation12 + $0xf8] sm:$0xff] }
  0x6e   : > { %671 = vmatpush.msrb.mxu0 %v586_v22  ;;  %690 = vmatpush.msrb.mxu1 %v523_v36  ;;  %v774_v36 = vld [vmem:[#allocation10 + $0x138] sm:$0xff] }
  0x6f   : > { %808 = vmatpush.msrb.mxu3 %v777_v20  ;;  %v883_v20 = vld [vmem:[#allocation12 + $0x48] sm:$0xff] }
  0x70   : > { %672 = vmatpush.msrb.mxu0 %v585_v26  ;;  %691 = vmatpush.msrb.mxu1 %v522_v38  ;;  %v739_v26 = vld [vmem:[#allocation10 + $0x20] sm:$0xff] }
  0x71   : > { %809 = vmatpush.msrb.mxu3 %v776_v25  ;;  %v880_v25 = vld [vmem:[#allocation12 + $0x30] sm:$0xff] }
  0x72   : > { %673 = vmatpush.msrb.mxu0 %v584_v30  ;;  %692 = vmatpush.msrb.mxu1 %v521_v39  ;;  %v775_v30 = vld [vmem:[#allocation10 + $0x140] sm:$0xff] }
  0x73   : > { %810 = vmatpush.msrb.mxu3 %v775_v30  ;;  %v898_v30 = vld [vmem:[#allocation12 + $0xc0] sm:$0xff] }
  0x74   : > { %674 = vmatpush.msrb.mxu0 %v583_v35  ;;  %693 = vmatpush.msrb.mxu1 %v520_v40  ;;  %v758_v35 = vld [vmem:[#allocation10 + $0xb8] sm:$0xff]  ;;  %v757_v40 = vld [vmem:[#allocation10 + $0xb0] sm:$0xff] }
  0x75   : > { %811 = vmatpush.msrb.mxu3 %v774_v36 }
  0x76   : > { %694 = vmatpush.msrb.mxu1 %v519_v41  ;;  %823 = vmatpush.msra.mxu0 %v750_v61  ;;  %v773_v41 = vld [vmem:[#allocation10 + $0x130] sm:$0xff] }
  0x77   : > { %812 = vmatpush.msrb.mxu3 %v773_v41 }
  0xd2   : > { %v475_v5 = vpop.f32.mrf.mxu0 }
  0xd3   : > { %v1696_v9 = vadd.f32 %v1238_v62, %v475_v5  ;;  %v749_v62 = vld [vmem:[#allocation10 + $0x70] sm:$0xff] }
  0xd4   : > { %824 = vmatpush.msra.mxu0 %v749_v62  ;;  %v745_v5 = vld [vmem:[#allocation10 + $0x50] sm:$0xff] }
  0xd5   : > { %v1124_v14 = vmul.f32 -1.442695, %v1696_v9 }
  0xd6   : > { %825 = vmatpush.msra.mxu0 %v748_v63 }
  0xd7   : > { %1242 = vpow2.f32 %v1124_v14  ;;  %v742_v14 = vld [vmem:[#allocation10 + $0x38] sm:$0xff] }
  0xd8   : > { %826 = vmatpush.msra.mxu0 %v747_v1 }
  0xda   : > { %827 = vmatpush.msra.mxu0 %v746_v2 }
  0xdc   : > { %828 = vmatpush.msra.mxu0 %v745_v5 }
  0xdd   : > { %v1243_v34 = vpop.eup %1242 }
  0xde   : > { %v481_v37 = vadd.f32 1.0, %v1243_v34  ;;  %829 = vmatpush.msra.mxu0 %v744_v8 }
  0xe0   : > { %1244 = vrcp.f32 %v481_v37  ;;  %v493_v45 = vand.u32 2147483648, %v481_v37  ;;  %v491_v47 = vand.u32 2147483647, %v481_v37  ;;  %vm487_vm2 = vweird.f32 %v481_v37  ;;  %830 = vmatpush.msra.mxu0 %v743_v11 }
  0xe2   : > { %v494_v49 = vor.u32 1.1754944e-38, %v493_v45  ;;  %vm492_vm4 = vcmp.eq.f32.partialorder %v491_v47, 8.507059e+37  ;;  %831 = vmatpush.msra.mxu0 %v742_v14  ;;  %v772_v45 = vld [vmem:[#allocation10 + $0x128] sm:$0xff] }
  0xe3   : > { %813 = vmatpush.msrb.mxu3 %v772_v45  ;;  %v887_v14 = vld [vmem:[#allocation12 + $0x68] sm:$0xff]  ;;  %v894_v45 = vld [vmem:[#allocation12 + $0xa0] sm:$0xff] }
  0xe4   : > { %832 = vmatpush.msra.mxu0 %v741_v18  ;;  %v884_v18 = vld [vmem:[#allocation12 + $0x50] sm:$0xff] }
  0xe6   : > { %v1245_v42 = vpop.eup %1244  ;;  %833 = vmatpush.msra.mxu0 %v740_v21  ;;  %v882_v21 = vld [vmem:[#allocation12 + $0x40] sm:$0xff] }
  0xe7   : > { %v483_v43 = vmul.f32 %v1245_v42, %v481_v37  ;;  %vm488_vm1 = vweird.f32 %v1245_v42  ;;  %v737_v37 = vld [vmem:[#allocation10 + $0x10] sm:$0xff] }
  0xe8   : > { %vm489_vm3 = vmor %vm487_vm2, %vm488_vm1  ;;  %834 = vmatpush.msra.mxu0 %v739_v26  ;;  %v900_v26 = vld [vmem:[#allocation12 + $0xd0] sm:$0xff] }
  0xe9   : > { %v484_v44 = vsub.f32 1.0, %v483_v43 }
  0xea   : > { %835 = vmatpush.msra.mxu0 %v738_v31  ;;  %v877_v31 = vld [vmem:[#allocation12 + $0x18] sm:$0xff] }
  0xeb   : > { %v485_v46 = vmul.f32 %v1245_v42, %v484_v44  ;;  %v756_v44 = vld [vmem:[#allocation10 + $0xa8] sm:$0xff] }
  0xec   : > { %836 = vmatpush.msra.mxu0 %v737_v37  ;;  %v1240_v37 = vld [vmem:[%s1759_s6] ss:$0 sm:$0xff] }
  0xed   : > { %v486_v48 = vadd.f32 %v1245_v42, %v485_v46  ;;  %v735_v46 = vld [vmem:[#allocation10] sm:$0xff] }
  0xef   : > { %v490_v50 = vsel %vm489_vm3, %v1245_v42, %v486_v48  ;;  %v736_v42 = vld [vmem:[#allocation10 + $0x8] sm:$0xff]  ;;  %v755_v48 = vld [vmem:[#allocation10 + $0xa0] sm:$0xff] }
  0xf0   : > { %v495_v51 = vsel %vm492_vm4, %v494_v49, %v490_v50  ;;  %837 = vmatpush.msra.mxu0 %v736_v42  ;;  %v771_v49 = vld [vmem:[#allocation10 + $0x120] sm:$0xff]  ;;  %v754_v50 = vld [vmem:[#allocation10 + $0x98] sm:$0xff]  ;;  %v895_v42 = vld [vmem:[#allocation12 + $0xa8] sm:$0xff] }
  0xf1   : > { %v497_v52 = vmul.f32 %v495_v51, %v1696_v9  ;;  %v764_v9 = vld [vmem:[#allocation10 + $0xe8] sm:$0xff]  ;;  %814 = vmatpush.msrb.mxu3 %v771_v49  ;;  %v770_v51 = vld [vmem:[#allocation10 + $0x118] sm:$0xff] }
  0xf2   : > { %785 = vmatpush.msrb.mxu2 %v764_v9  ;;  %838 = vmatpush.msra.mxu0 %v735_v46  ;;  %v891_v49 = vld [vmem:[#allocation12 + $0x88] sm:$0xff] }
  0xf3   : > { %v500_v53 = vrot.slane %v497_v52, 7  ;;  %v504_v54 = vrot.slane %v497_v52, 6  ;;  %v508_v55 = vrot.slane %v497_v52, 5  ;;  %v512_v56 = vrot.slane %v497_v52, 4  ;;  %815 = vmatpush.msrb.mxu3 %v770_v51 }
  0xf4   : > { %786 = vmatpush.msrb.mxu2 %v763_v12  ;;  %v889_v12 = vld [vmem:[#allocation12 + $0x78] sm:$0xff] }
  0xf5   : > { %502 = vst [vmem:[#allocation3 + $0x10] sm:$0xfe] %v500_v53  ;;  %v769_v53 = vld [vmem:[#allocation10 + $0x110] sm:$0xff] }
  0xf6   : > { %506 = vst [vmem:[#allocation3] sm:$0xfc] %v504_v54  ;;  %787 = vmatpush.msrb.mxu2 %v762_v16  ;;  %v752_v54 = vld [vmem:[#allocation10 + $0x88] sm:$0xff]  ;;  %816 = vmatpush.msrb.mxu3 %v769_v53  ;;  %v885_v16 = vld [vmem:[#allocation12 + $0x58] sm:$0xff] }
  0xf7   : > { %510 = vst [vmem:[#allocation3 + $0x18] sm:$0xf8] %v508_v55  ;;  %v768_v55 = vld [vmem:[#allocation10 + $0x108] sm:$0xff] }
  0xf8   : > { %514 = vst [vmem:[#allocation3 + $0x8] sm:$0xf0] %v512_v56  ;;  %788 = vmatpush.msrb.mxu2 %v761_v19  ;;  %v751_v56 = vld [vmem:[#allocation10 + $0x80] sm:$0xff]  ;;  %817 = vmatpush.msrb.mxu3 %v768_v55  ;;  %v904_v19 = vld [vmem:[#allocation12 + $0xf0] sm:$0xff] }
  0xfa   : > { %789 = vmatpush.msrb.mxu2 %v760_v24  ;;  %v901_v24 = vld [vmem:[#allocation12 + $0xd8] sm:$0xff] }
  0xfc   : > { %v515_v57 = vld [vmem:[#allocation3 + $0x10] sm:$0xff]  ;;  %790 = vmatpush.msrb.mxu2 %v759_v29 }
  0xfd   : > { %615 = vmatmul.f32.vlgmr.msra.gmra.mxu1 %v515_v57  ;;  %724 = vst [vmem:[#allocation3 + $0x10] sm:$0x1] %v1506_v0  ;;  %v516_v58 = vld [vmem:[#allocation3] sm:$0xff]  ;;  %v767_v57 = vld [vmem:[#allocation10 + $0x100] sm:$0xff] }
  0xfe   : > { %635 = vmatmul.f32.vlgmr.msra.gmra.mxu2 %v516_v58  ;;  %729 = vst [vmem:[#allocation3] sm:$0x3] %v1506_v0  ;;  %v517_v59 = vld [vmem:[#allocation3 + $0x18] sm:$0xff]  ;;  %818 = vmatpush.msrb.mxu3 %v767_v57  ;;  %v878_v29 = vld [vmem:[#allocation12 + $0x20] sm:$0xff] }
  0xff   : > { %655 = vmatmul.f32.vlgmr.msra.gmra.mxu3 %v517_v59  ;;  %v518_v60 = vld [vmem:[#allocation3 + $0x8] sm:$0xff]  ;;  %791 = vmatpush.msrb.mxu2 %v758_v35  ;;  %v876_v35 = vld [vmem:[#allocation12 + $0x10] sm:$0xff] }
 0x100   : > { %675 = vmatmul.f32.vlgmr.msrb.gmra.mxu0 %v518_v60  ;;  %906 = vmatpush.msra.mxu1 %v905_v17 }
 0x101   : > { %792 = vmatpush.msrb.mxu2 %v757_v40  ;;  %v875_v40 = vld [vmem:[#allocation12 + $0x8] sm:$0xff] }
 0x102   : > { %907 = vmatpush.msra.mxu1 %v904_v19 }
 0x103   : > { %793 = vmatpush.msrb.mxu2 %v756_v44 }
 0x105   : > { %695 = vmatmul.f32.vlgmr.msrb.gmra.mxu1 %v497_v52  ;;  %794 = vmatpush.msrb.mxu2 %v755_v48  ;;  %v753_v52 = vld [vmem:[#allocation10 + $0x90] sm:$0xff] }
 0x106   : > { %v892_v48 = vld [vmem:[#allocation12 + $0x90] sm:$0xff] }
 0x107   : > { %795 = vmatpush.msrb.mxu2 %v754_v50  ;;  %v890_v50 = vld [vmem:[#allocation12 + $0x80] sm:$0xff] }
 0x109   : > { %796 = vmatpush.msrb.mxu2 %v753_v52 }
 0x10b   : > { %797 = vmatpush.msrb.mxu2 %v752_v54 }
 0x10d   : > { %798 = vmatpush.msrb.mxu2 %v751_v56 }
 0x10f   : > { %926 = vmatpush.msra.mxu2 %v889_v12 }
 0x111   : > { %927 = vmatpush.msra.mxu2 %v888_v13 }
 0x113   : > { %928 = vmatpush.msra.mxu2 %v887_v14 }
 0x17a   : > { %v616_v15 = vpop.f32.mrf.mxu1 }
 0x17d   : > { %v676_v32 = vpop.f32.mrf.mxu0 }
 0x181   : > { %v636_v22 = vpop.f32.mrf.mxu2 }
 0x182   : > { %v637_v23 = vadd.f32 %v636_v22, %v616_v15  ;;  %v656_v27 = vpop.f32.mrf.mxu3  ;;  %v696_v38 = vpop.f32.mrf.mxu1  ;;  %v886_v15 = vld [vmem:[#allocation12 + $0x60] sm:$0xff] }
 0x183   : > { %929 = vmatpush.msra.mxu2 %v886_v15  ;;  %v902_v22 = vld [vmem:[#allocation12 + $0xe0] sm:$0xff] }
 0x184   : > { %v657_v28 = vadd.f32 %v656_v27, %v637_v23  ;;  %v881_v23 = vld [vmem:[#allocation12 + $0x38] sm:$0xff]  ;;  %v879_v27 = vld [vmem:[#allocation12 + $0x28] sm:$0xff] }
 0x185   : > { %930 = vmatpush.msra.mxu2 %v885_v16 }
 0x186   : > { %v677_v34 = vadd.f32 %v676_v32, %v657_v28  ;;  %v899_v28 = vld [vmem:[#allocation12 + $0xc8] sm:$0xff] }
 0x187   : > { %931 = vmatpush.msra.mxu2 %v884_v18 }
 0x188   : > { %v697_v39 = vadd.f32 %v696_v38, %v677_v34  ;;  %v897_v34 = vld [vmem:[#allocation12 + $0xb8] sm:$0xff] }
 0x189   : > { %932 = vmatpush.msra.mxu2 %v883_v20 }
 0x18a   : > { %v703_v43 = vadd.f32 %v1239_v33, %v697_v39  ;;  %v896_v39 = vld [vmem:[#allocation12 + $0xb0] sm:$0xff] }
 0x18b   : > { %933 = vmatpush.msra.mxu2 %v882_v21 }
 0x18c   : > { %v1125_v47 = vmul.f32 -1.442695, %v703_v43 }
 0x18d   : > { %934 = vmatpush.msra.mxu2 %v881_v23 }
 0x18e   : > { %1246 = vpow2.f32 %v1125_v47  ;;  %v893_v47 = vld [vmem:[#allocation12 + $0x98] sm:$0xff] }
 0x18f   : > { %935 = vmatpush.msra.mxu2 %v880_v25 }
 0x191   : > { %936 = vmatpush.msra.mxu2 %v879_v27 }
 0x193   : > { %937 = vmatpush.msra.mxu2 %v878_v29 }
 0x194   : > { %v1247_v58 = vpop.eup %1246 }
 0x195   : > { %v707_v59 = vadd.f32 1.0, %v1247_v58  ;;  %938 = vmatpush.msra.mxu2 %v877_v31 }
 0x197   : > { %1248 = vrcp.f32 %v707_v59  ;;  %v719_v63 = vand.u32 2147483648, %v707_v59  ;;  %v717_v2 = vand.u32 2147483647, %v707_v59  ;;  %vm713_vm6 = vweird.f32 %v707_v59  ;;  %939 = vmatpush.msra.mxu2 %v876_v35 }
 0x199   : > { %v720_v4 = vor.u32 1.1754944e-38, %v719_v63  ;;  %vm718_vm8 = vcmp.eq.f32.partialorder %v717_v2, 8.507059e+37  ;;  %940 = vmatpush.msra.mxu2 %v875_v40 }
 0x19d   : > { %v1249_v60 = vpop.eup %1248 }
 0x19e   : > { %v709_v61 = vmul.f32 %v1249_v60, %v707_v59  ;;  %vm714_vm5 = vweird.f32 %v1249_v60 }
 0x19f   : > { %vm715_vm7 = vmor %vm713_vm6, %vm714_vm5 }
 0x1a0   : > { %v710_v62 = vsub.f32 1.0, %v709_v61 }
 0x1a2   : > { %v711_v1 = vmul.f32 %v1249_v60, %v710_v62 }
 0x1a4   : > { %v712_v3 = vadd.f32 %v1249_v60, %v711_v1 }
 0x1a6   : > { %v716_v5 = vsel %vm715_vm7, %v1249_v60, %v712_v3  ;;  %v1241_v3 = vld [vmem:[%s1761_s8] ss:$0 sm:$0xff] }
 0x1a7   : > { %v721_v6 = vsel %vm718_vm8, %v720_v4, %v716_v5 }
 0x1a8   : > { %v723_v7 = vmul.f32 %v721_v6, %v703_v43  ;;  %v874_v43 = vld [vmem:[#allocation12] sm:$0xff] }
 0x1a9   : > { %941 = vmatpush.msra.mxu2 %v874_v43 }
 0x1aa   : > { %v726_v8 = vrot.slane %v723_v7, 7  ;;  %v730_v9 = vrot.slane %v723_v7, 6  ;;  %839 = vmatmul.f32.vlgmr.msra.gmra.mxu0 %v723_v7 }
 0x1ac   : > { %728 = vst [vmem:[#allocation3 + $0x10] sm:$0xfe] %v726_v8 }
 0x1ad   : > { %732 = vst [vmem:[#allocation3] sm:$0xfc] %v730_v9 }
 0x1b3   : > { %v733_v10 = vld [vmem:[#allocation3 + $0x10] sm:$0xff] }
 0x1b4   : > { %799 = vmatmul.f32.vlgmr.msrb.gmra.mxu2 %v733_v10  ;;  %868 = vst [vmem:[#allocation3 + $0x10] sm:$0x1] %v1506_v0  ;;  %v734_v11 = vld [vmem:[#allocation3] sm:$0xff]  ;;  %v903_v0 = vld [vmem:[#allocation12 + $0xe8] sm:$0xff] }
 0x1b5   : > { %819 = vmatmul.f32.vlgmr.msrb.gmra.mxu3 %v734_v11  ;;  %908 = vmatpush.msra.mxu1 %v903_v0 }
 0x1b7   : > { %909 = vmatpush.msra.mxu1 %v902_v22 }
 0x1b9   : > { %910 = vmatpush.msra.mxu1 %v901_v24 }
 0x1bb   : > { %911 = vmatpush.msra.mxu1 %v900_v26 }
 0x1bd   : > { %912 = vmatpush.msra.mxu1 %v899_v28 }
 0x1bf   : > { %913 = vmatpush.msra.mxu1 %v898_v30 }
 0x1c1   : > { %914 = vmatpush.msra.mxu1 %v897_v34 }
 0x1c3   : > { %915 = vmatpush.msra.mxu1 %v896_v39 }
 0x1c5   : > { %916 = vmatpush.msra.mxu1 %v895_v42 }
 0x1c7   : > { %917 = vmatpush.msra.mxu1 %v894_v45 }
 0x1c9   : > { %918 = vmatpush.msra.mxu1 %v893_v47 }
 0x1cb   : > { %919 = vmatpush.msra.mxu1 %v892_v48 }
 0x1cd   : > { %920 = vmatpush.msra.mxu1 %v891_v49 }
 0x1cf   : > { %921 = vmatpush.msra.mxu1 %v890_v50 }
 0x227   : > { %v840_v38 = vpop.f32.mrf.mxu0 }
 0x237   : > { %v800_v32 = vpop.f32.mrf.mxu2 }
 0x238   : > { %v820_v33 = vpop.f32.mrf.mxu3 }
 0x239   : > { %v821_v36 = vadd.f32 %v820_v33, %v800_v32 }
 0x23b   : > { %v841_v41 = vadd.f32 %v840_v38, %v821_v36 }
 0x23d   : > { %v847_v44 = vadd.f32 %v1240_v37, %v841_v41 }
 0x23f   : > { %v1126_v46 = vmul.f32 -1.442695, %v847_v44 }
 0x241   : > { %1250 = vpow2.f32 %v1126_v46 }
 0x247   : > { %v1251_v51 = vpop.eup %1250 }
 0x248   : > { %v851_v52 = vadd.f32 1.0, %v1251_v51 }
 0x24a   : > { %1252 = vrcp.f32 %v851_v52  ;;  %v863_v56 = vand.u32 2147483648, %v851_v52  ;;  %v861_v58 = vand.u32 2147483647, %v851_v52  ;;  %vm857_vm10 = vweird.f32 %v851_v52 }
 0x24c   : > { %v864_v60 = vor.u32 1.1754944e-38, %v863_v56  ;;  %vm862_vm12 = vcmp.eq.f32.partialorder %v861_v58, 8.507059e+37 }
 0x250   : > { %v1253_v53 = vpop.eup %1252 }
 0x251   : > { %v853_v54 = vmul.f32 %v1253_v53, %v851_v52  ;;  %vm858_vm9 = vweird.f32 %v1253_v53 }
 0x252   : > { %vm859_vm11 = vmor %vm857_vm10, %vm858_vm9 }
 0x253   : > { %v854_v55 = vsub.f32 1.0, %v853_v54 }
 0x255   : > { %v855_v57 = vmul.f32 %v1253_v53, %v854_v55 }
 0x257   : > { %v856_v59 = vadd.f32 %v1253_v53, %v855_v57 }
 0x259   : > { %v860_v61 = vsel %vm859_vm11, %v1253_v53, %v856_v59 }
 0x25a   : > { %v865_v62 = vsel %vm862_vm12, %v864_v60, %v860_v61 }
 0x25b   : > { %v867_v63 = vmul.f32 %v865_v62, %v847_v44 }
 0x25d   : > { %v870_v1 = vrot.slane %v867_v63, 7  ;;  %942 = vmatmul.f32.vlgmr.msra.gmra.mxu2 %v867_v63 }
 0x25f   : > { %872 = vst [vmem:[#allocation3 + $0x10] sm:$0xfe] %v870_v1 }
 0x266   : > { %v873_v2 = vld [vmem:[#allocation3 + $0x10] sm:$0xff] }
 0x267   : > { %922 = vmatmul.f32.vlgmr.msra.gmra.mxu1 %v873_v2 }
 0x2e0   : > { %v943_v4 = vpop.f32.mrf.mxu2 }
 0x2e4   : > { %v923_v5 = vpop.f32.mrf.mxu1 }
 0x2e5   : > { %v944_v6 = vadd.f32 %v943_v4, %v923_v5 }
 0x2e7   : > { %v950_v7 = vadd.f32 %v1241_v3, %v944_v6 }
 0x2e9   : > { %v1127_v8 = vmul.f32 -1.442695, %v950_v7 }
 0x2eb   : > { %1254 = vpow2.f32 %v1127_v8 }
 0x2f1   : > { %v1255_v9 = vpop.eup %1254 }
 0x2f2   : > { %v954_v10 = vadd.f32 1.0, %v1255_v9 }
 0x2f4   : > { %1256 = vrcp.f32 %v954_v10  ;;  %v966_v14 = vand.u32 2147483648, %v954_v10  ;;  %v964_v16 = vand.u32 2147483647, %v954_v10  ;;  %vm960_vm14 = vweird.f32 %v954_v10 }
 0x2f6   : > { %v967_v18 = vor.u32 1.1754944e-38, %v966_v14  ;;  %vm965_vm1 = vcmp.eq.f32.partialorder %v964_v16, 8.507059e+37 }
 0x2fa   : > { %v1257_v11 = vpop.eup %1256 }
 0x2fb   : > { %v956_v12 = vmul.f32 %v1257_v11, %v954_v10  ;;  %vm961_vm13 = vweird.f32 %v1257_v11 }
 0x2fc   : > { %vm962_vm15 = vmor %vm960_vm14, %vm961_vm13 }
 0x2fd   : > { %v957_v13 = vsub.f32 1.0, %v956_v12 }
 0x2ff   : > { %v958_v15 = vmul.f32 %v1257_v11, %v957_v13 }
 0x301   : > { %v959_v17 = vadd.f32 %v1257_v11, %v958_v15 }
 0x303   : > { %v963_v19 = vsel %vm962_vm15, %v1257_v11, %v959_v17 }
 0x304   : > { %v968_v20 = vsel %vm965_vm1, %v967_v18, %v963_v19 }
 0x305   : > { %v970_v0 = vmul.f32 %v968_v20, %v950_v7 }
 0x307   : > { %971 = vst.msk [vmem:[%s432_s1] sm:$0xff] %vm435_vm0, %v970_v0 }
 0x308   : > { %1435 = shalt.err (!%p1432_p13)
}
 0x309   : > { %1150 = dma.vmem_to_hbm [thread:$0]  (%p1649_p0), %s987_s3, 128, %s989_s5, %s973_s12  }
 0x30a PF: > { %s1000_s24 = sand.u32 1, %s1478_s30   ;;  %p1170_p2 = pnand %p1114_p6, %p1656_p5 }
 0x30b   : > { %s1001_s17 = scalar_lea.sflag [#allocation6], %s1000_s24 }
 0x30c   : > { %p1171_p4 = pneg %p1170_p2 }
 0x30e   : > { %1473 = dma.done.wait (%p1171_p4), %s1001_s17, 128  }
 0x30f   : > { %1475 = vsyncadd (%p1171_p4), %s1001_s17, 4294967168  ;;  %s27_s14 = sadd.s32 1, %s1498_s14   ;;  %s1777_s30 = smov %s1482_s10 }
 0x310   : > { %p24_p7 = scmp.ge.s32.totalorder %s27_s14, 4   ;;  %s1778_s10 = smov %s1486_s11 }
 0x311   : > { %s1779_s11 = smov %s1654_s28  ;;  %s1780_s12 = smov %s1494_s13 }
 0x312   : > { %s1781_s13 = smov %s1783_s26  ;;  %26 = sbr.rel (!%p24_p7) target bundleno = 12 (0xc), region = 117 }
 0x317   :  { %1007 = vsyncpa [#allocation5], 1 }
 0x318   :  { %1009 = vsyncpa [#allocation5 + $0x1], 1 }
 0x319   :  { %1010 = vsyncpa [#allocation8], 1 }
 0x31a   :  { %1011 = vsyncpa [#allocation11], 1 }
 0x31b   :  { %1012 = vsyncpa [#allocation6], 1 }
 0x31c   :  { %1014 = vsyncpa [#allocation6 + $0x1], 1 }

</bundles_post_ra>
